<compile_context>
chip_gen: v6e
topology: v6e:2x2x1
jax: 0.10.0
libtpu: 0.0.40
codegen_flags: <defaults>
</compile_context>

<pallas_src>
import functools

import jax
import jax.numpy as jnp
from jax.experimental import pallas as pl
from jax.experimental.pallas import tpu as pltpu


def _round_up(x, m):
    return ((x + m - 1) // m) * m


def _pick_time_chunk(T, cap=32):
    # largest divisor of T that is <= cap; PSPs are streamed chunk by chunk.
    for c in range(min(T, cap), 0, -1):
        if T % c == 0:
            return c
    return T


def _snn_kernel(
    # inputs
    psp_ref,    # (T_chunk, B_pad, H_pad) precomputed hidden-layer PSPs (this chunk)
    wo_ref,     # (H_pad, D_pad)          output layer weight (zero padded)
    hs0_ref,    # (B_pad, H_pad)          initial hidden spike state
    hv0_ref,    # (B_pad, H_pad)          initial hidden volt state
    os0_ref,    # (B_pad, D_pad)          initial output spike state
    ov0_ref,    # (B_pad, D_pad)          initial output volt state
    # output
    out_ref,    # (B_pad, D_pad)          summed output spikes over all T
    # scratch (persists across time-chunk grid steps)
    hs_ref, hv_ref, os_ref, ov_ref, acc_ref,
    *,
    hid_param, out_param, B, H, D_out, T_chunk,
):
    h_vdecay, h_vth, h_win, _h_gamp, h_rate = hid_param
    o_vdecay, o_vth, o_win, _o_gamp, o_rate = out_param

    c = pl.program_id(0)

    @pl.when(c == 0)
    def _():
        hs_ref[...] = hs0_ref[...]
        hv_ref[...] = hv0_ref[...]
        os_ref[...] = os0_ref[...]
        ov_ref[...] = ov0_ref[...]
        acc_ref[...] = jnp.zeros_like(acc_ref)

    B_pad, H_pad = hs_ref.shape
    D_pad = os_ref.shape[1]
    needs_mask_h = (B_pad != B) or (H_pad != H)
    needs_mask_o = (B_pad != B) or (D_pad != D_out)
    neg_inf = jnp.float32(-jnp.inf)

    # Masks for the GLOBAL max used by the dynamic threshold: padded rows/cols
    # must not participate (zero padding is unsafe when all real values are
    # negative). Hoisted out of the time loop.
    mask_h = (
        (jax.lax.broadcasted_iota(jnp.int32, (B_pad, H_pad), 0) < B)
        & (jax.lax.broadcasted_iota(jnp.int32, (B_pad, H_pad), 1) < H)
    )
    mask_o = (
        (jax.lax.broadcasted_iota(jnp.int32, (B_pad, D_pad), 0) < B)
        & (jax.lax.broadcasted_iota(jnp.int32, (B_pad, D_pad), 1) < D_out)
    )

    def dyn_max(x, mask, needs_mask):
        if needs_mask:
            x = jnp.where(mask, x, neg_inf)
        return jnp.max(x)

    w_out = wo_ref[...]  # hoisted: loaded once per chunk

    def step(t, carry):
        hs, hv, os_, ov, acc = carry

        # ---- hidden LIF cell (its matmul was hoisted out of the recurrence) ----
        psp_h = psp_ref[t]                                      # (B_pad, H_pad)
        volt_h = hv * h_vdecay * (1.0 - hs) + psp_h
        sc_h = h_rate * volt_h
        vth_h = h_vth * jnp.tanh(h_win * dyn_max(sc_h, mask_h, needs_mask_h))
        spk_h = (sc_h > vth_h).astype(jnp.float32)

        # ---- output LIF cell (truly recurrent: needs spk_h of this step) ----
        psp_o = jnp.dot(spk_h, w_out, preferred_element_type=jnp.float32)
        volt_o = ov * o_vdecay * (1.0 - os_) + psp_o
        sc_o = o_rate * volt_o
        vth_o = o_vth * jnp.tanh(o_win * dyn_max(sc_o, mask_o, needs_mask_o))
        spk_o = (sc_o > vth_o).astype(jnp.float32)

        return spk_h, volt_h, spk_o, volt_o, acc + spk_o

    carry0 = (hs_ref[...], hv_ref[...], os_ref[...], ov_ref[...], acc_ref[...])
    hs, hv, os_, ov, acc = jax.lax.fori_loop(
        0, T_chunk, step, carry0, unroll=(T_chunk <= 16)
    )

    hs_ref[...] = hs
    hv_ref[...] = hv
    os_ref[...] = os_
    ov_ref[...] = ov
    acc_ref[...] = acc

    @pl.when(c == pl.num_programs(0) - 1)
    def _():
        out_ref[...] = acc


def snn_forward(spike_data, w_hid, w_out, init_states, hid_param, out_param,
                time_chunk_cap=32):
    """spike_data: (B, input_dim, T) float32 (PyTorch layout). Returns (B, output_dim)."""
    B, D_in, T = spike_data.shape
    H = w_hid.shape[1]
    D_out = w_out.shape[1]
    (hs0, hv0), (os0, ov0) = init_states

    B_pad = _round_up(B, 8)      # sublane
    H_pad = _round_up(H, 128)    # lane
    D_pad = _round_up(D_out, 128)

    # Hoisted, non-recurrent hidden-layer matmul over ALL timesteps at once
    # (one big MXU-friendly contraction; also avoids a separate transpose pass).
    psp_h = jnp.einsum(
        "bdt,dh->tbh",
        spike_data.astype(jnp.float32),
        w_hid.astype(jnp.float32),
        preferred_element_type=jnp.float32,
    )
    psp_h = jnp.pad(psp_h, ((0, 0), (0, B_pad - B), (0, H_pad - H)))

    w_out_p = jnp.pad(w_out.astype(jnp.float32), ((0, H_pad - H), (0, D_pad - D_out)))
    hs0_p = jnp.pad(hs0.astype(jnp.float32), ((0, B_pad - B), (0, H_pad - H)))
    hv0_p = jnp.pad(hv0.astype(jnp.float32), ((0, B_pad - B), (0, H_pad - H)))
    os0_p = jnp.pad(os0.astype(jnp.float32), ((0, B_pad - B), (0, D_pad - D_out)))
    ov0_p = jnp.pad(ov0.astype(jnp.float32), ((0, B_pad - B), (0, D_pad - D_out)))

    T_chunk = _pick_time_chunk(T, cap=time_chunk_cap)
    n_chunks = T // T_chunk

    kernel = functools.partial(
        _snn_kernel,
        hid_param=tuple(float(v) for v in hid_param),
        out_param=tuple(float(v) for v in out_param),
        B=B, H=H, D_out=D_out, T_chunk=T_chunk,
    )

    grid_spec = pltpu.PrefetchScalarGridSpec(
        num_scalar_prefetch=0,
        grid=(n_chunks,),
        in_specs=[
            pl.BlockSpec((T_chunk, B_pad, H_pad), lambda c: (c, 0, 0)),  # streamed PSPs
            pl.BlockSpec((H_pad, D_pad), lambda c: (0, 0)),              # W_out (const)
            pl.BlockSpec((B_pad, H_pad), lambda c: (0, 0)),
            pl.BlockSpec((B_pad, H_pad), lambda c: (0, 0)),
            pl.BlockSpec((B_pad, D_pad), lambda c: (0, 0)),
            pl.BlockSpec((B_pad, D_pad), lambda c: (0, 0)),
        ],
        out_specs=pl.BlockSpec((B_pad, D_pad), lambda c: (0, 0)),
        scratch_shapes=[
            pltpu.VMEM((B_pad, H_pad), jnp.float32),   # hidden spike state
            pltpu.VMEM((B_pad, H_pad), jnp.float32),   # hidden volt state
            pltpu.VMEM((B_pad, D_pad), jnp.float32),   # output spike state
            pltpu.VMEM((B_pad, D_pad), jnp.float32),   # output volt state
            pltpu.VMEM((B_pad, D_pad), jnp.float32),   # output-spike accumulator
        ],
    )

    out_pad = pl.pallas_call(
        kernel,
        out_shape=jax.ShapeDtypeStruct((B_pad, D_pad), jnp.float32),
        grid_spec=grid_spec,
        compiler_params=pltpu.CompilerParams(
            dimension_semantics=("arbitrary",),  # time recurrence is sequential
        ),
    )(psp_h, w_out_p, hs0_p, hv0_p, os0_p, ov0_p)

    return out_pad[:B, :D_out]


def snn_reference(spike_data, w_hid, w_out, init_states, hid_param, out_param):
    """Pure-JAX reference mirroring the PyTorch forward exactly."""
    B, D_in, T = spike_data.shape
    (hs, hv), (os_, ov) = init_states
    h_vdecay, h_vth, h_win, _hg, h_rate = hid_param
    o_vdecay, o_vth, o_win, _og, o_rate = out_param
    out = jnp.zeros((B, w_out.shape[1]), jnp.float32)
    for tt in range(T):
        s_in = spike_data[:, :, tt]
        volt_h = hv * h_vdecay * (1.0 - hs) + s_in @ w_hid
        sc_h = h_rate * volt_h
        spk_h = (sc_h > h_vth * jnp.tanh(h_win * jnp.max(sc_h))).astype(jnp.float32)
        hs, hv = spk_h, volt_h
        volt_o = ov * o_vdecay * (1.0 - os_) + spk_h @ w_out
        sc_o = o_rate * volt_o
        spk_o = (sc_o > o_vth * jnp.tanh(o_win * jnp.max(sc_o))).astype(jnp.float32)
        os_, ov = spk_o, volt_o
        out = out + spk_o
    return out


if __name__ == "__main__":
    # small shapes consistent with the module
    batch_size = 2
    input_dim = 16
    hidden_dim = 32
    output_dim = 8
    spike_ts = 8

    # (vdecay, vth, grad_win(=threshold_adaptation), grad_amp, rate_scale)
    hid_param = (0.5, 0.3, 1.0, 1.0, 1.2)
    out_param = (0.5, 0.3, 1.0, 1.0, 1.2)

    key = jax.random.PRNGKey(0)
    k1, k2, k3 = jax.random.split(key, 3)

    # PyTorch Linear-style uniform init, stored (in, out) so psp = x @ W
    bh = 1.0 / jnp.sqrt(input_dim)
    bo = 1.0 / jnp.sqrt(hidden_dim)
    w_hid = jax.random.uniform(k1, (input_dim, hidden_dim), jnp.float32, -bh, bh)
    w_out = jax.random.uniform(k2, (hidden_dim, output_dim), jnp.float32, -bo, bo)

    # Bernoulli spike input, shape (B, input_dim, spike_ts) like the PyTorch view target
    spike_data = (
        jax.random.uniform(k3, (batch_size, input_dim, spike_ts)) < 0.5
    ).astype(jnp.float32)

    # zero initial LIF states (spike, volt) per layer
    init_states = (
        (jnp.zeros((batch_size, hidden_dim), jnp.float32),
         jnp.zeros((batch_size, hidden_dim), jnp.float32)),
        (jnp.zeros((batch_size, output_dim), jnp.float32),
         jnp.zeros((batch_size, output_dim), jnp.float32)),
    )

    out = snn_forward(spike_data, w_hid, w_out, init_states, hid_param, out_param)
    out = jax.block_until_ready(out)

    ref = snn_reference(spike_data, w_hid, w_out, init_states, hid_param, out_param)
    assert out.shape == (batch_size, output_dim)
    assert jnp.allclose(out, ref, atol=1e-5), (out, ref)

    print("KERNEL_OK")
</pallas_src>

<mosaic_0001>
module attributes {stable_mosaic.version = 11 : i64} {
  func.func @_snn_kernel(%arg0: i32, %arg1: memref<8x8x128xf32, #tpu.memory_space<vmem>>, %arg2: memref<128x128xf32, #tpu.memory_space<vmem>>, %arg3: memref<8x128xf32, #tpu.memory_space<vmem>>, %arg4: memref<8x128xf32, #tpu.memory_space<vmem>>, %arg5: memref<8x128xf32, #tpu.memory_space<vmem>>, %arg6: memref<8x128xf32, #tpu.memory_space<vmem>>, %arg7: memref<8x128xf32, #tpu.memory_space<vmem>>, %arg8: memref<8x128xf32, #tpu.memory_space<vmem>>, %arg9: memref<8x128xf32, #tpu.memory_space<vmem>>, %arg10: memref<8x128xf32, #tpu.memory_space<vmem>>, %arg11: memref<8x128xf32, #tpu.memory_space<vmem>>, %arg12: memref<8x128xf32, #tpu.memory_space<vmem>>) attributes {dimension_semantics = [#tpu.dimension_semantics<arbitrary>], iteration_bounds = array<i64: 1>, scalar_prefetch = 0 : i64, scratch_operands = 5 : i64, tpu.core_type = #tpu.core_type<tc>, window_params = [{transform_indices = @transform_0, window_bounds = array<i64: 8, 8, 128>}, {pipeline_mode = #tpu.pipeline_mode<synchronous>, transform_indices = @transform_1, window_bounds = array<i64: 128, 128>}, {pipeline_mode = #tpu.pipeline_mode<synchronous>, transform_indices = @transform_2, window_bounds = array<i64: 8, 128>}, {pipeline_mode = #tpu.pipeline_mode<synchronous>, transform_indices = @transform_3, window_bounds = array<i64: 8, 128>}, {pipeline_mode = #tpu.pipeline_mode<synchronous>, transform_indices = @transform_4, window_bounds = array<i64: 8, 128>}, {pipeline_mode = #tpu.pipeline_mode<synchronous>, transform_indices = @transform_5, window_bounds = array<i64: 8, 128>}, {pipeline_mode = #tpu.pipeline_mode<synchronous>, transform_indices = @transform_6, window_bounds = array<i64: 8, 128>}]} {
    %c0_i32 = arith.constant 0 : i32
    %0 = arith.cmpi eq, %arg0, %c0_i32 : i32
    %1 = arith.extui %0 : i1 to i32
    %c0_i32_0 = arith.constant 0 : i32
    %2 = arith.cmpi ne, %1, %c0_i32_0 : i32
    scf.if %2 {
      %c0_148 = arith.constant 0 : index
      %c0_149 = arith.constant 0 : index
      %407 = vector.load %arg3[%c0_148, %c0_149] : memref<8x128xf32, #tpu.memory_space<vmem>>, vector<8x128xf32>
      %c0_150 = arith.constant 0 : index
      %c0_151 = arith.constant 0 : index
      %408 = vector.load %arg8[%c0_150, %c0_151] : memref<8x128xf32, #tpu.memory_space<vmem>>, vector<8x128xf32>
      tpu.vector_store %arg8[%c0_150, %c0_151], %407 {strides = array<i32>} : memref<8x128xf32, #tpu.memory_space<vmem>>, vector<8x128xf32>,
      %c0_152 = arith.constant 0 : index
      %c0_153 = arith.constant 0 : index
      %409 = vector.load %arg4[%c0_152, %c0_153] : memref<8x128xf32, #tpu.memory_space<vmem>>, vector<8x128xf32>
      %c0_154 = arith.constant 0 : index
      %c0_155 = arith.constant 0 : index
      %410 = vector.load %arg9[%c0_154, %c0_155] : memref<8x128xf32, #tpu.memory_space<vmem>>, vector<8x128xf32>
      tpu.vector_store %arg9[%c0_154, %c0_155], %409 {strides = array<i32>} : memref<8x128xf32, #tpu.memory_space<vmem>>, vector<8x128xf32>,
      %c0_156 = arith.constant 0 : index
      %c0_157 = arith.constant 0 : index
      %411 = vector.load %arg5[%c0_156, %c0_157] : memref<8x128xf32, #tpu.memory_space<vmem>>, vector<8x128xf32>
      %c0_158 = arith.constant 0 : index
      %c0_159 = arith.constant 0 : index
      %412 = vector.load %arg10[%c0_158, %c0_159] : memref<8x128xf32, #tpu.memory_space<vmem>>, vector<8x128xf32>
      tpu.vector_store %arg10[%c0_158, %c0_159], %411 {strides = array<i32>} : memref<8x128xf32, #tpu.memory_space<vmem>>, vector<8x128xf32>,
      %c0_160 = arith.constant 0 : index
      %c0_161 = arith.constant 0 : index
      %413 = vector.load %arg6[%c0_160, %c0_161] : memref<8x128xf32, #tpu.memory_space<vmem>>, vector<8x128xf32>
      %c0_162 = arith.constant 0 : index
      %c0_163 = arith.constant 0 : index
      %414 = vector.load %arg11[%c0_162, %c0_163] : memref<8x128xf32, #tpu.memory_space<vmem>>, vector<8x128xf32>
      tpu.vector_store %arg11[%c0_162, %c0_163], %413 {strides = array<i32>} : memref<8x128xf32, #tpu.memory_space<vmem>>, vector<8x128xf32>,
      %cst_164 = arith.constant 0.000000e+00 : f32
      %415 = vector.broadcast %cst_164 : f32 to vector<8x128xf32>
      %c0_165 = arith.constant 0 : index
      %c0_166 = arith.constant 0 : index
      %416 = vector.load %arg12[%c0_165, %c0_166] : memref<8x128xf32, #tpu.memory_space<vmem>>, vector<8x128xf32>
      tpu.vector_store %arg12[%c0_165, %c0_166], %415 {strides = array<i32>} : memref<8x128xf32, #tpu.memory_space<vmem>>, vector<8x128xf32>,
    } else {
    }
    %3 = tpu.iota {dimensions = array<i32: 0>} : vector<8x128xi32>
    %c2_i32 = arith.constant 2 : i32
    %4 = vector.broadcast %c2_i32 : i32 to vector<8x128xi32>
    %5 = arith.cmpi slt, %3, %4 : vector<8x128xi32>
    %6 = tpu.iota {dimensions = array<i32: 1>} : vector<8x128xi32>
    %c32_i32 = arith.constant 32 : i32
    %7 = vector.broadcast %c32_i32 : i32 to vector<8x128xi32>
    %8 = arith.cmpi slt, %6, %7 : vector<8x128xi32>
    %9 = arith.andi %5, %8 : vector<8x128xi1>
    %10 = tpu.iota {dimensions = array<i32: 0>} : vector<8x128xi32>
    %c2_i32_1 = arith.constant 2 : i32
    %11 = vector.broadcast %c2_i32_1 : i32 to vector<8x128xi32>
    %12 = arith.cmpi slt, %10, %11 : vector<8x128xi32>
    %13 = tpu.iota {dimensions = array<i32: 1>} : vector<8x128xi32>
    %c8_i32 = arith.constant 8 : i32
    %14 = vector.broadcast %c8_i32 : i32 to vector<8x128xi32>
    %15 = arith.cmpi slt, %13, %14 : vector<8x128xi32>
    %16 = arith.andi %12, %15 : vector<8x128xi1>
    %c0 = arith.constant 0 : index
    %c0_2 = arith.constant 0 : index
    %17 = vector.load %arg2[%c0, %c0_2] : memref<128x128xf32, #tpu.memory_space<vmem>>, vector<128x128xf32>
    %c0_3 = arith.constant 0 : index
    %c0_4 = arith.constant 0 : index
    %18 = vector.load %arg8[%c0_3, %c0_4] : memref<8x128xf32, #tpu.memory_space<vmem>>, vector<8x128xf32>
    %c0_5 = arith.constant 0 : index
    %c0_6 = arith.constant 0 : index
    %19 = vector.load %arg9[%c0_5, %c0_6] : memref<8x128xf32, #tpu.memory_space<vmem>>, vector<8x128xf32>
    %c0_7 = arith.constant 0 : index
    %c0_8 = arith.constant 0 : index
    %20 = vector.load %arg10[%c0_7, %c0_8] : memref<8x128xf32, #tpu.memory_space<vmem>>, vector<8x128xf32>
    %c0_9 = arith.constant 0 : index
    %c0_10 = arith.constant 0 : index
    %21 = vector.load %arg11[%c0_9, %c0_10] : memref<8x128xf32, #tpu.memory_space<vmem>>, vector<8x128xf32>
    %c0_11 = arith.constant 0 : index
    %c0_12 = arith.constant 0 : index
    %22 = vector.load %arg12[%c0_11, %c0_12] : memref<8x128xf32, #tpu.memory_space<vmem>>, vector<8x128xf32>
    %cst = arith.constant 0xFF800000 : f32
    %c0_i32_13 = arith.constant 0 : i32
    %23 = arith.index_cast %c0_i32_13 : i32 to index
    %c0_14 = arith.constant 0 : index
    %c0_15 = arith.constant 0 : index
    %24 = vector.load %arg1[%23, %c0_14, %c0_15] : memref<8x8x128xf32, #tpu.memory_space<vmem>>, vector<1x8x128xf32>
    %25 = vector.shape_cast %24 : vector<1x8x128xf32> to vector<8x128xf32>
    %cst_16 = arith.constant 5.000000e-01 : f32
    %26 = vector.broadcast %cst_16 : f32 to vector<8x128xf32>
    %27 = arith.mulf %19, %26 : vector<8x128xf32>
    %cst_17 = arith.constant 1.000000e+00 : f32
    %28 = vector.broadcast %cst_17 : f32 to vector<8x128xf32>
    %29 = arith.subf %28, %18 : vector<8x128xf32>
    %30 = arith.mulf %27, %29 : vector<8x128xf32>
    %31 = arith.addf %30, %25 : vector<8x128xf32>
    %cst_18 = arith.constant 1.200000e+00 : f32
    %32 = vector.broadcast %cst_18 : f32 to vector<8x128xf32>
    %33 = arith.mulf %32, %31 : vector<8x128xf32>
    %34 = vector.broadcast %cst : f32 to vector<8x128xf32>
    %35 = arith.select %9, %33, %34 : vector<8x128xi1>, vector<8x128xf32>
    %36 = vector.shape_cast %35 : vector<8x128xf32> to vector<1x8x128xf32>
    %cst_19 = arith.constant dense<0xFF800000> : vector<1xf32>
    %37 = vector.multi_reduction <maximumf>, %36, %cst_19 [1, 2] : vector<1x8x128xf32> to vector<1xf32>
    %38 = vector.shape_cast %37 : vector<1xf32> to vector<1x1x1xf32>
    %39 = vector.extract %38[0, 0, 0] : f32 from vector<1x1x1xf32>
    %cst_20 = arith.constant 1.000000e+00 : f32
    %40 = arith.mulf %cst_20, %39 : f32
    %41 = math.tanh %40 : f32
    %cst_21 = arith.constant 3.000000e-01 : f32
    %42 = arith.mulf %cst_21, %41 : f32
    %43 = vector.broadcast %42 : f32 to vector<8x128xf32>
    %44 = arith.cmpf ogt, %33, %43 : vector<8x128xf32>
    %45 = arith.extui %44 : vector<8x128xi1> to vector<8x128xi32>
    %46 = arith.sitofp %45 : vector<8x128xi32> to vector<8x128xf32>
    %cst_22 = arith.constant dense<0.000000e+00> : vector<8x128xf32>
    %47 = tpu.matmul %46, %17, %cst_22 {dimension_numbers = #tpu.dot_dimension_numbers<[1], [0], [0], [1], [0, 0, 1, 1], [], []>} : vector<8x128xf32>, vector<128x128xf32>, vector<8x128xf32> -> vector<8x128xf32>
    %cst_23 = arith.constant 5.000000e-01 : f32
    %48 = vector.broadcast %cst_23 : f32 to vector<8x128xf32>
    %49 = arith.mulf %21, %48 : vector<8x128xf32>
    %cst_24 = arith.constant 1.000000e+00 : f32
    %50 = vector.broadcast %cst_24 : f32 to vector<8x128xf32>
    %51 = arith.subf %50, %20 : vector<8x128xf32>
    %52 = arith.mulf %49, %51 : vector<8x128xf32>
    %53 = arith.addf %52, %47 : vector<8x128xf32>
    %cst_25 = arith.constant 1.200000e+00 : f32
    %54 = vector.broadcast %cst_25 : f32 to vector<8x128xf32>
    %55 = arith.mulf %54, %53 : vector<8x128xf32>
    %56 = vector.broadcast %cst : f32 to vector<8x128xf32>
    %57 = arith.select %16, %55, %56 : vector<8x128xi1>, vector<8x128xf32>
    %58 = vector.shape_cast %57 : vector<8x128xf32> to vector<1x8x128xf32>
    %cst_26 = arith.constant dense<0xFF800000> : vector<1xf32>
    %59 = vector.multi_reduction <maximumf>, %58, %cst_26 [1, 2] : vector<1x8x128xf32> to vector<1xf32>
    %60 = vector.shape_cast %59 : vector<1xf32> to vector<1x1x1xf32>
    %61 = vector.extract %60[0, 0, 0] : f32 from vector<1x1x1xf32>
    %cst_27 = arith.constant 1.000000e+00 : f32
    %62 = arith.mulf %cst_27, %61 : f32
    %63 = math.tanh %62 : f32
    %cst_28 = arith.constant 3.000000e-01 : f32
    %64 = arith.mulf %cst_28, %63 : f32
    %65 = vector.broadcast %64 : f32 to vector<8x128xf32>
    %66 = arith.cmpf ogt, %55, %65 : vector<8x128xf32>
    %67 = arith.extui %66 : vector<8x128xi1> to vector<8x128xi32>
    %68 = arith.sitofp %67 : vector<8x128xi32> to vector<8x128xf32>
    %69 = arith.addf %22, %68 : vector<8x128xf32>
    %c1_i32 = arith.constant 1 : i32
    %70 = arith.index_cast %c1_i32 : i32 to index
    %c0_29 = arith.constant 0 : index
    %c0_30 = arith.constant 0 : index
    %71 = vector.load %arg1[%70, %c0_29, %c0_30] : memref<8x8x128xf32, #tpu.memory_space<vmem>>, vector<1x8x128xf32>
    %72 = vector.shape_cast %71 : vector<1x8x128xf32> to vector<8x128xf32>
    %cst_31 = arith.constant 5.000000e-01 : f32
    %73 = vector.broadcast %cst_31 : f32 to vector<8x128xf32>
    %74 = arith.mulf %31, %73 : vector<8x128xf32>
    %cst_32 = arith.constant 1.000000e+00 : f32
    %75 = vector.broadcast %cst_32 : f32 to vector<8x128xf32>
    %76 = arith.subf %75, %46 : vector<8x128xf32>
    %77 = arith.mulf %74, %76 : vector<8x128xf32>
    %78 = arith.addf %77, %72 : vector<8x128xf32>
    %cst_33 = arith.constant 1.200000e+00 : f32
    %79 = vector.broadcast %cst_33 : f32 to vector<8x128xf32>
    %80 = arith.mulf %79, %78 : vector<8x128xf32>
    %81 = vector.broadcast %cst : f32 to vector<8x128xf32>
    %82 = arith.select %9, %80, %81 : vector<8x128xi1>, vector<8x128xf32>
    %83 = vector.shape_cast %82 : vector<8x128xf32> to vector<1x8x128xf32>
    %cst_34 = arith.constant dense<0xFF800000> : vector<1xf32>
    %84 = vector.multi_reduction <maximumf>, %83, %cst_34 [1, 2] : vector<1x8x128xf32> to vector<1xf32>
    %85 = vector.shape_cast %84 : vector<1xf32> to vector<1x1x1xf32>
    %86 = vector.extract %85[0, 0, 0] : f32 from vector<1x1x1xf32>
    %cst_35 = arith.constant 1.000000e+00 : f32
    %87 = arith.mulf %cst_35, %86 : f32
    %88 = math.tanh %87 : f32
    %cst_36 = arith.constant 3.000000e-01 : f32
    %89 = arith.mulf %cst_36, %88 : f32
    %90 = vector.broadcast %89 : f32 to vector<8x128xf32>
    %91 = arith.cmpf ogt, %80, %90 : vector<8x128xf32>
    %92 = arith.extui %91 : vector<8x128xi1> to vector<8x128xi32>
    %93 = arith.sitofp %92 : vector<8x128xi32> to vector<8x128xf32>
    %cst_37 = arith.constant dense<0.000000e+00> : vector<8x128xf32>
    %94 = tpu.matmul %93, %17, %cst_37 {dimension_numbers = #tpu.dot_dimension_numbers<[1], [0], [0], [1], [0, 0, 1, 1], [], []>} : vector<8x128xf32>, vector<128x128xf32>, vector<8x128xf32> -> vector<8x128xf32>
    %cst_38 = arith.constant 5.000000e-01 : f32
    %95 = vector.broadcast %cst_38 : f32 to vector<8x128xf32>
    %96 = arith.mulf %53, %95 : vector<8x128xf32>
    %cst_39 = arith.constant 1.000000e+00 : f32
    %97 = vector.broadcast %cst_39 : f32 to vector<8x128xf32>
    %98 = arith.subf %97, %68 : vector<8x128xf32>
    %99 = arith.mulf %96, %98 : vector<8x128xf32>
    %100 = arith.addf %99, %94 : vector<8x128xf32>
    %cst_40 = arith.constant 1.200000e+00 : f32
    %101 = vector.broadcast %cst_40 : f32 to vector<8x128xf32>
    %102 = arith.mulf %101, %100 : vector<8x128xf32>
    %103 = vector.broadcast %cst : f32 to vector<8x128xf32>
    %104 = arith.select %16, %102, %103 : vector<8x128xi1>, vector<8x128xf32>
    %105 = vector.shape_cast %104 : vector<8x128xf32> to vector<1x8x128xf32>
    %cst_41 = arith.constant dense<0xFF800000> : vector<1xf32>
    %106 = vector.multi_reduction <maximumf>, %105, %cst_41 [1, 2] : vector<1x8x128xf32> to vector<1xf32>
    %107 = vector.shape_cast %106 : vector<1xf32> to vector<1x1x1xf32>
    %108 = vector.extract %107[0, 0, 0] : f32 from vector<1x1x1xf32>
    %cst_42 = arith.constant 1.000000e+00 : f32
    %109 = arith.mulf %cst_42, %108 : f32
    %110 = math.tanh %109 : f32
    %cst_43 = arith.constant 3.000000e-01 : f32
    %111 = arith.mulf %cst_43, %110 : f32
    %112 = vector.broadcast %111 : f32 to vector<8x128xf32>
    %113 = arith.cmpf ogt, %102, %112 : vector<8x128xf32>
    %114 = arith.extui %113 : vector<8x128xi1> to vector<8x128xi32>
    %115 = arith.sitofp %114 : vector<8x128xi32> to vector<8x128xf32>
    %116 = arith.addf %69, %115 : vector<8x128xf32>
    %c2_i32_44 = arith.constant 2 : i32
    %117 = arith.index_cast %c2_i32_44 : i32 to index
    %c0_45 = arith.constant 0 : index
    %c0_46 = arith.constant 0 : index
    %118 = vector.load %arg1[%117, %c0_45, %c0_46] : memref<8x8x128xf32, #tpu.memory_space<vmem>>, vector<1x8x128xf32>
    %119 = vector.shape_cast %118 : vector<1x8x128xf32> to vector<8x128xf32>
    %cst_47 = arith.constant 5.000000e-01 : f32
    %120 = vector.broadcast %cst_47 : f32 to vector<8x128xf32>
    %121 = arith.mulf %78, %120 : vector<8x128xf32>
    %cst_48 = arith.constant 1.000000e+00 : f32
    %122 = vector.broadcast %cst_48 : f32 to vector<8x128xf32>
    %123 = arith.subf %122, %93 : vector<8x128xf32>
    %124 = arith.mulf %121, %123 : vector<8x128xf32>
    %125 = arith.addf %124, %119 : vector<8x128xf32>
    %cst_49 = arith.constant 1.200000e+00 : f32
    %126 = vector.broadcast %cst_49 : f32 to vector<8x128xf32>
    %127 = arith.mulf %126, %125 : vector<8x128xf32>
    %128 = vector.broadcast %cst : f32 to vector<8x128xf32>
    %129 = arith.select %9, %127, %128 : vector<8x128xi1>, vector<8x128xf32>
    %130 = vector.shape_cast %129 : vector<8x128xf32> to vector<1x8x128xf32>
    %cst_50 = arith.constant dense<0xFF800000> : vector<1xf32>
    %131 = vector.multi_reduction <maximumf>, %130, %cst_50 [1, 2] : vector<1x8x128xf32> to vector<1xf32>
    %132 = vector.shape_cast %131 : vector<1xf32> to vector<1x1x1xf32>
    %133 = vector.extract %132[0, 0, 0] : f32 from vector<1x1x1xf32>
    %cst_51 = arith.constant 1.000000e+00 : f32
    %134 = arith.mulf %cst_51, %133 : f32
    %135 = math.tanh %134 : f32
    %cst_52 = arith.constant 3.000000e-01 : f32
    %136 = arith.mulf %cst_52, %135 : f32
    %137 = vector.broadcast %136 : f32 to vector<8x128xf32>
    %138 = arith.cmpf ogt, %127, %137 : vector<8x128xf32>
    %139 = arith.extui %138 : vector<8x128xi1> to vector<8x128xi32>
    %140 = arith.sitofp %139 : vector<8x128xi32> to vector<8x128xf32>
    %cst_53 = arith.constant dense<0.000000e+00> : vector<8x128xf32>
    %141 = tpu.matmul %140, %17, %cst_53 {dimension_numbers = #tpu.dot_dimension_numbers<[1], [0], [0], [1], [0, 0, 1, 1], [], []>} : vector<8x128xf32>, vector<128x128xf32>, vector<8x128xf32> -> vector<8x128xf32>
    %cst_54 = arith.constant 5.000000e-01 : f32
    %142 = vector.broadcast %cst_54 : f32 to vector<8x128xf32>
    %143 = arith.mulf %100, %142 : vector<8x128xf32>
    %cst_55 = arith.constant 1.000000e+00 : f32
    %144 = vector.broadcast %cst_55 : f32 to vector<8x128xf32>
    %145 = arith.subf %144, %115 : vector<8x128xf32>
    %146 = arith.mulf %143, %145 : vector<8x128xf32>
    %147 = arith.addf %146, %141 : vector<8x128xf32>
    %cst_56 = arith.constant 1.200000e+00 : f32
    %148 = vector.broadcast %cst_56 : f32 to vector<8x128xf32>
    %149 = arith.mulf %148, %147 : vector<8x128xf32>
    %150 = vector.broadcast %cst : f32 to vector<8x128xf32>
    %151 = arith.select %16, %149, %150 : vector<8x128xi1>, vector<8x128xf32>
    %152 = vector.shape_cast %151 : vector<8x128xf32> to vector<1x8x128xf32>
    %cst_57 = arith.constant dense<0xFF800000> : vector<1xf32>
    %153 = vector.multi_reduction <maximumf>, %152, %cst_57 [1, 2] : vector<1x8x128xf32> to vector<1xf32>
    %154 = vector.shape_cast %153 : vector<1xf32> to vector<1x1x1xf32>
    %155 = vector.extract %154[0, 0, 0] : f32 from vector<1x1x1xf32>
    %cst_58 = arith.constant 1.000000e+00 : f32
    %156 = arith.mulf %cst_58, %155 : f32
    %157 = math.tanh %156 : f32
    %cst_59 = arith.constant 3.000000e-01 : f32
    %158 = arith.mulf %cst_59, %157 : f32
    %159 = vector.broadcast %158 : f32 to vector<8x128xf32>
    %160 = arith.cmpf ogt, %149, %159 : vector<8x128xf32>
    %161 = arith.extui %160 : vector<8x128xi1> to vector<8x128xi32>
    %162 = arith.sitofp %161 : vector<8x128xi32> to vector<8x128xf32>
    %163 = arith.addf %116, %162 : vector<8x128xf32>
    %c3_i32 = arith.constant 3 : i32
    %164 = arith.index_cast %c3_i32 : i32 to index
    %c0_60 = arith.constant 0 : index
    %c0_61 = arith.constant 0 : index
    %165 = vector.load %arg1[%164, %c0_60, %c0_61] : memref<8x8x128xf32, #tpu.memory_space<vmem>>, vector<1x8x128xf32>
    %166 = vector.shape_cast %165 : vector<1x8x128xf32> to vector<8x128xf32>
    %cst_62 = arith.constant 5.000000e-01 : f32
    %167 = vector.broadcast %cst_62 : f32 to vector<8x128xf32>
    %168 = arith.mulf %125, %167 : vector<8x128xf32>
    %cst_63 = arith.constant 1.000000e+00 : f32
    %169 = vector.broadcast %cst_63 : f32 to vector<8x128xf32>
    %170 = arith.subf %169, %140 : vector<8x128xf32>
    %171 = arith.mulf %168, %170 : vector<8x128xf32>
    %172 = arith.addf %171, %166 : vector<8x128xf32>
    %cst_64 = arith.constant 1.200000e+00 : f32
    %173 = vector.broadcast %cst_64 : f32 to vector<8x128xf32>
    %174 = arith.mulf %173, %172 : vector<8x128xf32>
    %175 = vector.broadcast %cst : f32 to vector<8x128xf32>
    %176 = arith.select %9, %174, %175 : vector<8x128xi1>, vector<8x128xf32>
    %177 = vector.shape_cast %176 : vector<8x128xf32> to vector<1x8x128xf32>
    %cst_65 = arith.constant dense<0xFF800000> : vector<1xf32>
    %178 = vector.multi_reduction <maximumf>, %177, %cst_65 [1, 2] : vector<1x8x128xf32> to vector<1xf32>
    %179 = vector.shape_cast %178 : vector<1xf32> to vector<1x1x1xf32>
    %180 = vector.extract %179[0, 0, 0] : f32 from vector<1x1x1xf32>
    %cst_66 = arith.constant 1.000000e+00 : f32
    %181 = arith.mulf %cst_66, %180 : f32
    %182 = math.tanh %181 : f32
    %cst_67 = arith.constant 3.000000e-01 : f32
    %183 = arith.mulf %cst_67, %182 : f32
    %184 = vector.broadcast %183 : f32 to vector<8x128xf32>
    %185 = arith.cmpf ogt, %174, %184 : vector<8x128xf32>
    %186 = arith.extui %185 : vector<8x128xi1> to vector<8x128xi32>
    %187 = arith.sitofp %186 : vector<8x128xi32> to vector<8x128xf32>
    %cst_68 = arith.constant dense<0.000000e+00> : vector<8x128xf32>
    %188 = tpu.matmul %187, %17, %cst_68 {dimension_numbers = #tpu.dot_dimension_numbers<[1], [0], [0], [1], [0, 0, 1, 1], [], []>} : vector<8x128xf32>, vector<128x128xf32>, vector<8x128xf32> -> vector<8x128xf32>
    %cst_69 = arith.constant 5.000000e-01 : f32
    %189 = vector.broadcast %cst_69 : f32 to vector<8x128xf32>
    %190 = arith.mulf %147, %189 : vector<8x128xf32>
    %cst_70 = arith.constant 1.000000e+00 : f32
    %191 = vector.broadcast %cst_70 : f32 to vector<8x128xf32>
    %192 = arith.subf %191, %162 : vector<8x128xf32>
    %193 = arith.mulf %190, %192 : vector<8x128xf32>
    %194 = arith.addf %193, %188 : vector<8x128xf32>
    %cst_71 = arith.constant 1.200000e+00 : f32
    %195 = vector.broadcast %cst_71 : f32 to vector<8x128xf32>
    %196 = arith.mulf %195, %194 : vector<8x128xf32>
    %197 = vector.broadcast %cst : f32 to vector<8x128xf32>
    %198 = arith.select %16, %196, %197 : vector<8x128xi1>, vector<8x128xf32>
    %199 = vector.shape_cast %198 : vector<8x128xf32> to vector<1x8x128xf32>
    %cst_72 = arith.constant dense<0xFF800000> : vector<1xf32>
    %200 = vector.multi_reduction <maximumf>, %199, %cst_72 [1, 2] : vector<1x8x128xf32> to vector<1xf32>
    %201 = vector.shape_cast %200 : vector<1xf32> to vector<1x1x1xf32>
    %202 = vector.extract %201[0, 0, 0] : f32 from vector<1x1x1xf32>
    %cst_73 = arith.constant 1.000000e+00 : f32
    %203 = arith.mulf %cst_73, %202 : f32
    %204 = math.tanh %203 : f32
    %cst_74 = arith.constant 3.000000e-01 : f32
    %205 = arith.mulf %cst_74, %204 : f32
    %206 = vector.broadcast %205 : f32 to vector<8x128xf32>
    %207 = arith.cmpf ogt, %196, %206 : vector<8x128xf32>
    %208 = arith.extui %207 : vector<8x128xi1> to vector<8x128xi32>
    %209 = arith.sitofp %208 : vector<8x128xi32> to vector<8x128xf32>
    %210 = arith.addf %163, %209 : vector<8x128xf32>
    %c4_i32 = arith.constant 4 : i32
    %211 = arith.index_cast %c4_i32 : i32 to index
    %c0_75 = arith.constant 0 : index
    %c0_76 = arith.constant 0 : index
    %212 = vector.load %arg1[%211, %c0_75, %c0_76] : memref<8x8x128xf32, #tpu.memory_space<vmem>>, vector<1x8x128xf32>
    %213 = vector.shape_cast %212 : vector<1x8x128xf32> to vector<8x128xf32>
    %cst_77 = arith.constant 5.000000e-01 : f32
    %214 = vector.broadcast %cst_77 : f32 to vector<8x128xf32>
    %215 = arith.mulf %172, %214 : vector<8x128xf32>
    %cst_78 = arith.constant 1.000000e+00 : f32
    %216 = vector.broadcast %cst_78 : f32 to vector<8x128xf32>
    %217 = arith.subf %216, %187 : vector<8x128xf32>
    %218 = arith.mulf %215, %217 : vector<8x128xf32>
    %219 = arith.addf %218, %213 : vector<8x128xf32>
    %cst_79 = arith.constant 1.200000e+00 : f32
    %220 = vector.broadcast %cst_79 : f32 to vector<8x128xf32>
    %221 = arith.mulf %220, %219 : vector<8x128xf32>
    %222 = vector.broadcast %cst : f32 to vector<8x128xf32>
    %223 = arith.select %9, %221, %222 : vector<8x128xi1>, vector<8x128xf32>
    %224 = vector.shape_cast %223 : vector<8x128xf32> to vector<1x8x128xf32>
    %cst_80 = arith.constant dense<0xFF800000> : vector<1xf32>
    %225 = vector.multi_reduction <maximumf>, %224, %cst_80 [1, 2] : vector<1x8x128xf32> to vector<1xf32>
    %226 = vector.shape_cast %225 : vector<1xf32> to vector<1x1x1xf32>
    %227 = vector.extract %226[0, 0, 0] : f32 from vector<1x1x1xf32>
    %cst_81 = arith.constant 1.000000e+00 : f32
    %228 = arith.mulf %cst_81, %227 : f32
    %229 = math.tanh %228 : f32
    %cst_82 = arith.constant 3.000000e-01 : f32
    %230 = arith.mulf %cst_82, %229 : f32
    %231 = vector.broadcast %230 : f32 to vector<8x128xf32>
    %232 = arith.cmpf ogt, %221, %231 : vector<8x128xf32>
    %233 = arith.extui %232 : vector<8x128xi1> to vector<8x128xi32>
    %234 = arith.sitofp %233 : vector<8x128xi32> to vector<8x128xf32>
    %cst_83 = arith.constant dense<0.000000e+00> : vector<8x128xf32>
    %235 = tpu.matmul %234, %17, %cst_83 {dimension_numbers = #tpu.dot_dimension_numbers<[1], [0], [0], [1], [0, 0, 1, 1], [], []>} : vector<8x128xf32>, vector<128x128xf32>, vector<8x128xf32> -> vector<8x128xf32>
    %cst_84 = arith.constant 5.000000e-01 : f32
    %236 = vector.broadcast %cst_84 : f32 to vector<8x128xf32>
    %237 = arith.mulf %194, %236 : vector<8x128xf32>
    %cst_85 = arith.constant 1.000000e+00 : f32
    %238 = vector.broadcast %cst_85 : f32 to vector<8x128xf32>
    %239 = arith.subf %238, %209 : vector<8x128xf32>
    %240 = arith.mulf %237, %239 : vector<8x128xf32>
    %241 = arith.addf %240, %235 : vector<8x128xf32>
    %cst_86 = arith.constant 1.200000e+00 : f32
    %242 = vector.broadcast %cst_86 : f32 to vector<8x128xf32>
    %243 = arith.mulf %242, %241 : vector<8x128xf32>
    %244 = vector.broadcast %cst : f32 to vector<8x128xf32>
    %245 = arith.select %16, %243, %244 : vector<8x128xi1>, vector<8x128xf32>
    %246 = vector.shape_cast %245 : vector<8x128xf32> to vector<1x8x128xf32>
    %cst_87 = arith.constant dense<0xFF800000> : vector<1xf32>
    %247 = vector.multi_reduction <maximumf>, %246, %cst_87 [1, 2] : vector<1x8x128xf32> to vector<1xf32>
    %248 = vector.shape_cast %247 : vector<1xf32> to vector<1x1x1xf32>
    %249 = vector.extract %248[0, 0, 0] : f32 from vector<1x1x1xf32>
    %cst_88 = arith.constant 1.000000e+00 : f32
    %250 = arith.mulf %cst_88, %249 : f32
    %251 = math.tanh %250 : f32
    %cst_89 = arith.constant 3.000000e-01 : f32
    %252 = arith.mulf %cst_89, %251 : f32
    %253 = vector.broadcast %252 : f32 to vector<8x128xf32>
    %254 = arith.cmpf ogt, %243, %253 : vector<8x128xf32>
    %255 = arith.extui %254 : vector<8x128xi1> to vector<8x128xi32>
    %256 = arith.sitofp %255 : vector<8x128xi32> to vector<8x128xf32>
    %257 = arith.addf %210, %256 : vector<8x128xf32>
    %c5_i32 = arith.constant 5 : i32
    %258 = arith.index_cast %c5_i32 : i32 to index
    %c0_90 = arith.constant 0 : index
    %c0_91 = arith.constant 0 : index
    %259 = vector.load %arg1[%258, %c0_90, %c0_91] : memref<8x8x128xf32, #tpu.memory_space<vmem>>, vector<1x8x128xf32>
    %260 = vector.shape_cast %259 : vector<1x8x128xf32> to vector<8x128xf32>
    %cst_92 = arith.constant 5.000000e-01 : f32
    %261 = vector.broadcast %cst_92 : f32 to vector<8x128xf32>
    %262 = arith.mulf %219, %261 : vector<8x128xf32>
    %cst_93 = arith.constant 1.000000e+00 : f32
    %263 = vector.broadcast %cst_93 : f32 to vector<8x128xf32>
    %264 = arith.subf %263, %234 : vector<8x128xf32>
    %265 = arith.mulf %262, %264 : vector<8x128xf32>
    %266 = arith.addf %265, %260 : vector<8x128xf32>
    %cst_94 = arith.constant 1.200000e+00 : f32
    %267 = vector.broadcast %cst_94 : f32 to vector<8x128xf32>
    %268 = arith.mulf %267, %266 : vector<8x128xf32>
    %269 = vector.broadcast %cst : f32 to vector<8x128xf32>
    %270 = arith.select %9, %268, %269 : vector<8x128xi1>, vector<8x128xf32>
    %271 = vector.shape_cast %270 : vector<8x128xf32> to vector<1x8x128xf32>
    %cst_95 = arith.constant dense<0xFF800000> : vector<1xf32>
    %272 = vector.multi_reduction <maximumf>, %271, %cst_95 [1, 2] : vector<1x8x128xf32> to vector<1xf32>
    %273 = vector.shape_cast %272 : vector<1xf32> to vector<1x1x1xf32>
    %274 = vector.extract %273[0, 0, 0] : f32 from vector<1x1x1xf32>
    %cst_96 = arith.constant 1.000000e+00 : f32
    %275 = arith.mulf %cst_96, %274 : f32
    %276 = math.tanh %275 : f32
    %cst_97 = arith.constant 3.000000e-01 : f32
    %277 = arith.mulf %cst_97, %276 : f32
    %278 = vector.broadcast %277 : f32 to vector<8x128xf32>
    %279 = arith.cmpf ogt, %268, %278 : vector<8x128xf32>
    %280 = arith.extui %279 : vector<8x128xi1> to vector<8x128xi32>
    %281 = arith.sitofp %280 : vector<8x128xi32> to vector<8x128xf32>
    %cst_98 = arith.constant dense<0.000000e+00> : vector<8x128xf32>
    %282 = tpu.matmul %281, %17, %cst_98 {dimension_numbers = #tpu.dot_dimension_numbers<[1], [0], [0], [1], [0, 0, 1, 1], [], []>} : vector<8x128xf32>, vector<128x128xf32>, vector<8x128xf32> -> vector<8x128xf32>
    %cst_99 = arith.constant 5.000000e-01 : f32
    %283 = vector.broadcast %cst_99 : f32 to vector<8x128xf32>
    %284 = arith.mulf %241, %283 : vector<8x128xf32>
    %cst_100 = arith.constant 1.000000e+00 : f32
    %285 = vector.broadcast %cst_100 : f32 to vector<8x128xf32>
    %286 = arith.subf %285, %256 : vector<8x128xf32>
    %287 = arith.mulf %284, %286 : vector<8x128xf32>
    %288 = arith.addf %287, %282 : vector<8x128xf32>
    %cst_101 = arith.constant 1.200000e+00 : f32
    %289 = vector.broadcast %cst_101 : f32 to vector<8x128xf32>
    %290 = arith.mulf %289, %288 : vector<8x128xf32>
    %291 = vector.broadcast %cst : f32 to vector<8x128xf32>
    %292 = arith.select %16, %290, %291 : vector<8x128xi1>, vector<8x128xf32>
    %293 = vector.shape_cast %292 : vector<8x128xf32> to vector<1x8x128xf32>
    %cst_102 = arith.constant dense<0xFF800000> : vector<1xf32>
    %294 = vector.multi_reduction <maximumf>, %293, %cst_102 [1, 2] : vector<1x8x128xf32> to vector<1xf32>
    %295 = vector.shape_cast %294 : vector<1xf32> to vector<1x1x1xf32>
    %296 = vector.extract %295[0, 0, 0] : f32 from vector<1x1x1xf32>
    %cst_103 = arith.constant 1.000000e+00 : f32
    %297 = arith.mulf %cst_103, %296 : f32
    %298 = math.tanh %297 : f32
    %cst_104 = arith.constant 3.000000e-01 : f32
    %299 = arith.mulf %cst_104, %298 : f32
    %300 = vector.broadcast %299 : f32 to vector<8x128xf32>
    %301 = arith.cmpf ogt, %290, %300 : vector<8x128xf32>
    %302 = arith.extui %301 : vector<8x128xi1> to vector<8x128xi32>
    %303 = arith.sitofp %302 : vector<8x128xi32> to vector<8x128xf32>
    %304 = arith.addf %257, %303 : vector<8x128xf32>
    %c6_i32 = arith.constant 6 : i32
    %305 = arith.index_cast %c6_i32 : i32 to index
    %c0_105 = arith.constant 0 : index
    %c0_106 = arith.constant 0 : index
    %306 = vector.load %arg1[%305, %c0_105, %c0_106] : memref<8x8x128xf32, #tpu.memory_space<vmem>>, vector<1x8x128xf32>
    %307 = vector.shape_cast %306 : vector<1x8x128xf32> to vector<8x128xf32>
    %cst_107 = arith.constant 5.000000e-01 : f32
    %308 = vector.broadcast %cst_107 : f32 to vector<8x128xf32>
    %309 = arith.mulf %266, %308 : vector<8x128xf32>
    %cst_108 = arith.constant 1.000000e+00 : f32
    %310 = vector.broadcast %cst_108 : f32 to vector<8x128xf32>
    %311 = arith.subf %310, %281 : vector<8x128xf32>
    %312 = arith.mulf %309, %311 : vector<8x128xf32>
    %313 = arith.addf %312, %307 : vector<8x128xf32>
    %cst_109 = arith.constant 1.200000e+00 : f32
    %314 = vector.broadcast %cst_109 : f32 to vector<8x128xf32>
    %315 = arith.mulf %314, %313 : vector<8x128xf32>
    %316 = vector.broadcast %cst : f32 to vector<8x128xf32>
    %317 = arith.select %9, %315, %316 : vector<8x128xi1>, vector<8x128xf32>
    %318 = vector.shape_cast %317 : vector<8x128xf32> to vector<1x8x128xf32>
    %cst_110 = arith.constant dense<0xFF800000> : vector<1xf32>
    %319 = vector.multi_reduction <maximumf>, %318, %cst_110 [1, 2] : vector<1x8x128xf32> to vector<1xf32>
    %320 = vector.shape_cast %319 : vector<1xf32> to vector<1x1x1xf32>
    %321 = vector.extract %320[0, 0, 0] : f32 from vector<1x1x1xf32>
    %cst_111 = arith.constant 1.000000e+00 : f32
    %322 = arith.mulf %cst_111, %321 : f32
    %323 = math.tanh %322 : f32
    %cst_112 = arith.constant 3.000000e-01 : f32
    %324 = arith.mulf %cst_112, %323 : f32
    %325 = vector.broadcast %324 : f32 to vector<8x128xf32>
    %326 = arith.cmpf ogt, %315, %325 : vector<8x128xf32>
    %327 = arith.extui %326 : vector<8x128xi1> to vector<8x128xi32>
    %328 = arith.sitofp %327 : vector<8x128xi32> to vector<8x128xf32>
    %cst_113 = arith.constant dense<0.000000e+00> : vector<8x128xf32>
    %329 = tpu.matmul %328, %17, %cst_113 {dimension_numbers = #tpu.dot_dimension_numbers<[1], [0], [0], [1], [0, 0, 1, 1], [], []>} : vector<8x128xf32>, vector<128x128xf32>, vector<8x128xf32> -> vector<8x128xf32>
    %cst_114 = arith.constant 5.000000e-01 : f32
    %330 = vector.broadcast %cst_114 : f32 to vector<8x128xf32>
    %331 = arith.mulf %288, %330 : vector<8x128xf32>
    %cst_115 = arith.constant 1.000000e+00 : f32
    %332 = vector.broadcast %cst_115 : f32 to vector<8x128xf32>
    %333 = arith.subf %332, %303 : vector<8x128xf32>
    %334 = arith.mulf %331, %333 : vector<8x128xf32>
    %335 = arith.addf %334, %329 : vector<8x128xf32>
    %cst_116 = arith.constant 1.200000e+00 : f32
    %336 = vector.broadcast %cst_116 : f32 to vector<8x128xf32>
    %337 = arith.mulf %336, %335 : vector<8x128xf32>
    %338 = vector.broadcast %cst : f32 to vector<8x128xf32>
    %339 = arith.select %16, %337, %338 : vector<8x128xi1>, vector<8x128xf32>
    %340 = vector.shape_cast %339 : vector<8x128xf32> to vector<1x8x128xf32>
    %cst_117 = arith.constant dense<0xFF800000> : vector<1xf32>
    %341 = vector.multi_reduction <maximumf>, %340, %cst_117 [1, 2] : vector<1x8x128xf32> to vector<1xf32>
    %342 = vector.shape_cast %341 : vector<1xf32> to vector<1x1x1xf32>
    %343 = vector.extract %342[0, 0, 0] : f32 from vector<1x1x1xf32>
    %cst_118 = arith.constant 1.000000e+00 : f32
    %344 = arith.mulf %cst_118, %343 : f32
    %345 = math.tanh %344 : f32
    %cst_119 = arith.constant 3.000000e-01 : f32
    %346 = arith.mulf %cst_119, %345 : f32
    %347 = vector.broadcast %346 : f32 to vector<8x128xf32>
    %348 = arith.cmpf ogt, %337, %347 : vector<8x128xf32>
    %349 = arith.extui %348 : vector<8x128xi1> to vector<8x128xi32>
    %350 = arith.sitofp %349 : vector<8x128xi32> to vector<8x128xf32>
    %351 = arith.addf %304, %350 : vector<8x128xf32>
    %c7_i32 = arith.constant 7 : i32
    %352 = arith.index_cast %c7_i32 : i32 to index
    %c0_120 = arith.constant 0 : index
    %c0_121 = arith.constant 0 : index
    %353 = vector.load %arg1[%352, %c0_120, %c0_121] : memref<8x8x128xf32, #tpu.memory_space<vmem>>, vector<1x8x128xf32>
    %354 = vector.shape_cast %353 : vector<1x8x128xf32> to vector<8x128xf32>
    %cst_122 = arith.constant 5.000000e-01 : f32
    %355 = vector.broadcast %cst_122 : f32 to vector<8x128xf32>
    %356 = arith.mulf %313, %355 : vector<8x128xf32>
    %cst_123 = arith.constant 1.000000e+00 : f32
    %357 = vector.broadcast %cst_123 : f32 to vector<8x128xf32>
    %358 = arith.subf %357, %328 : vector<8x128xf32>
    %359 = arith.mulf %356, %358 : vector<8x128xf32>
    %360 = arith.addf %359, %354 : vector<8x128xf32>
    %cst_124 = arith.constant 1.200000e+00 : f32
    %361 = vector.broadcast %cst_124 : f32 to vector<8x128xf32>
    %362 = arith.mulf %361, %360 : vector<8x128xf32>
    %363 = vector.broadcast %cst : f32 to vector<8x128xf32>
    %364 = arith.select %9, %362, %363 : vector<8x128xi1>, vector<8x128xf32>
    %365 = vector.shape_cast %364 : vector<8x128xf32> to vector<1x8x128xf32>
    %cst_125 = arith.constant dense<0xFF800000> : vector<1xf32>
    %366 = vector.multi_reduction <maximumf>, %365, %cst_125 [1, 2] : vector<1x8x128xf32> to vector<1xf32>
    %367 = vector.shape_cast %366 : vector<1xf32> to vector<1x1x1xf32>
    %368 = vector.extract %367[0, 0, 0] : f32 from vector<1x1x1xf32>
    %cst_126 = arith.constant 1.000000e+00 : f32
    %369 = arith.mulf %cst_126, %368 : f32
    %370 = math.tanh %369 : f32
    %cst_127 = arith.constant 3.000000e-01 : f32
    %371 = arith.mulf %cst_127, %370 : f32
    %372 = vector.broadcast %371 : f32 to vector<8x128xf32>
    %373 = arith.cmpf ogt, %362, %372 : vector<8x128xf32>
    %374 = arith.extui %373 : vector<8x128xi1> to vector<8x128xi32>
    %375 = arith.sitofp %374 : vector<8x128xi32> to vector<8x128xf32>
    %cst_128 = arith.constant dense<0.000000e+00> : vector<8x128xf32>
    %376 = tpu.matmul %375, %17, %cst_128 {dimension_numbers = #tpu.dot_dimension_numbers<[1], [0], [0], [1], [0, 0, 1, 1], [], []>} : vector<8x128xf32>, vector<128x128xf32>, vector<8x128xf32> -> vector<8x128xf32>
    %cst_129 = arith.constant 5.000000e-01 : f32
    %377 = vector.broadcast %cst_129 : f32 to vector<8x128xf32>
    %378 = arith.mulf %335, %377 : vector<8x128xf32>
    %cst_130 = arith.constant 1.000000e+00 : f32
    %379 = vector.broadcast %cst_130 : f32 to vector<8x128xf32>
    %380 = arith.subf %379, %350 : vector<8x128xf32>
    %381 = arith.mulf %378, %380 : vector<8x128xf32>
    %382 = arith.addf %381, %376 : vector<8x128xf32>
    %cst_131 = arith.constant 1.200000e+00 : f32
    %383 = vector.broadcast %cst_131 : f32 to vector<8x128xf32>
    %384 = arith.mulf %383, %382 : vector<8x128xf32>
    %385 = vector.broadcast %cst : f32 to vector<8x128xf32>
    %386 = arith.select %16, %384, %385 : vector<8x128xi1>, vector<8x128xf32>
    %387 = vector.shape_cast %386 : vector<8x128xf32> to vector<1x8x128xf32>
    %cst_132 = arith.constant dense<0xFF800000> : vector<1xf32>
    %388 = vector.multi_reduction <maximumf>, %387, %cst_132 [1, 2] : vector<1x8x128xf32> to vector<1xf32>
    %389 = vector.shape_cast %388 : vector<1xf32> to vector<1x1x1xf32>
    %390 = vector.extract %389[0, 0, 0] : f32 from vector<1x1x1xf32>
    %cst_133 = arith.constant 1.000000e+00 : f32
    %391 = arith.mulf %cst_133, %390 : f32
    %392 = math.tanh %391 : f32
    %cst_134 = arith.constant 3.000000e-01 : f32
    %393 = arith.mulf %cst_134, %392 : f32
    %394 = vector.broadcast %393 : f32 to vector<8x128xf32>
    %395 = arith.cmpf ogt, %384, %394 : vector<8x128xf32>
    %396 = arith.extui %395 : vector<8x128xi1> to vector<8x128xi32>
    %397 = arith.sitofp %396 : vector<8x128xi32> to vector<8x128xf32>
    %398 = arith.addf %351, %397 : vector<8x128xf32>
    %c8_i32_135 = arith.constant 8 : i32
    %c0_136 = arith.constant 0 : index
    %c0_137 = arith.constant 0 : index
    %399 = vector.load %arg8[%c0_136, %c0_137] : memref<8x128xf32, #tpu.memory_space<vmem>>, vector<8x128xf32>
    tpu.vector_store %arg8[%c0_136, %c0_137], %375 {strides = array<i32>} : memref<8x128xf32, #tpu.memory_space<vmem>>, vector<8x128xf32>,
    %c0_138 = arith.constant 0 : index
    %c0_139 = arith.constant 0 : index
    %400 = vector.load %arg9[%c0_138, %c0_139] : memref<8x128xf32, #tpu.memory_space<vmem>>, vector<8x128xf32>
    tpu.vector_store %arg9[%c0_138, %c0_139], %360 {strides = array<i32>} : memref<8x128xf32, #tpu.memory_space<vmem>>, vector<8x128xf32>,
    %c0_140 = arith.constant 0 : index
    %c0_141 = arith.constant 0 : index
    %401 = vector.load %arg10[%c0_140, %c0_141] : memref<8x128xf32, #tpu.memory_space<vmem>>, vector<8x128xf32>
    tpu.vector_store %arg10[%c0_140, %c0_141], %397 {strides = array<i32>} : memref<8x128xf32, #tpu.memory_space<vmem>>, vector<8x128xf32>,
    %c0_142 = arith.constant 0 : index
    %c0_143 = arith.constant 0 : index
    %402 = vector.load %arg11[%c0_142, %c0_143] : memref<8x128xf32, #tpu.memory_space<vmem>>, vector<8x128xf32>
    tpu.vector_store %arg11[%c0_142, %c0_143], %382 {strides = array<i32>} : memref<8x128xf32, #tpu.memory_space<vmem>>, vector<8x128xf32>,
    %c0_144 = arith.constant 0 : index
    %c0_145 = arith.constant 0 : index
    %403 = vector.load %arg12[%c0_144, %c0_145] : memref<8x128xf32, #tpu.memory_space<vmem>>, vector<8x128xf32>
    tpu.vector_store %arg12[%c0_144, %c0_145], %398 {strides = array<i32>} : memref<8x128xf32, #tpu.memory_space<vmem>>, vector<8x128xf32>,
    %c0_i32_146 = arith.constant 0 : i32
    %404 = arith.cmpi eq, %arg0, %c0_i32_146 : i32
    %405 = arith.extui %404 : i1 to i32
    %c0_i32_147 = arith.constant 0 : i32
    %406 = arith.cmpi ne, %405, %c0_i32_147 : i32
    scf.if %406 {
      %c0_148 = arith.constant 0 : index
      %c0_149 = arith.constant 0 : index
      %407 = vector.load %arg7[%c0_148, %c0_149] : memref<8x128xf32, #tpu.memory_space<vmem>>, vector<8x128xf32>
      tpu.vector_store %arg7[%c0_148, %c0_149], %398 {strides = array<i32>} : memref<8x128xf32, #tpu.memory_space<vmem>>, vector<8x128xf32>,
    } else {
    }
    return
  }
  func.func @transform_0(%arg0: i32) -> (i32, i32, i32) {
    %c0_i32 = arith.constant 0 : i32
    %c0_i32_0 = arith.constant 0 : i32
    %c0_i32_1 = arith.constant 0 : i32
    return %arg0, %c0_i32, %c0_i32_0 : i32, i32, i32
  }
  func.func @transform_1(%arg0: i32) -> (i32, i32) {
    %c0_i32 = arith.constant 0 : i32
    %c0_i32_0 = arith.constant 0 : i32
    %c0_i32_1 = arith.constant 0 : i32
    return %c0_i32, %c0_i32_0 : i32, i32
  }
  func.func @transform_2(%arg0: i32) -> (i32, i32) {
    %c0_i32 = arith.constant 0 : i32
    %c0_i32_0 = arith.constant 0 : i32
    %c0_i32_1 = arith.constant 0 : i32
    return %c0_i32, %c0_i32_0 : i32, i32
  }
  func.func @transform_3(%arg0: i32) -> (i32, i32) {
    %c0_i32 = arith.constant 0 : i32
    %c0_i32_0 = arith.constant 0 : i32
    %c0_i32_1 = arith.constant 0 : i32
    return %c0_i32, %c0_i32_0 : i32, i32
  }
  func.func @transform_4(%arg0: i32) -> (i32, i32) {
    %c0_i32 = arith.constant 0 : i32
    %c0_i32_0 = arith.constant 0 : i32
    %c0_i32_1 = arith.constant 0 : i32
    return %c0_i32, %c0_i32_0 : i32, i32
  }
  func.func @transform_5(%arg0: i32) -> (i32, i32) {
    %c0_i32 = arith.constant 0 : i32
    %c0_i32_0 = arith.constant 0 : i32
    %c0_i32_1 = arith.constant 0 : i32
    return %c0_i32, %c0_i32_0 : i32, i32
  }
  func.func @transform_6(%arg0: i32) -> (i32, i32) {
    %c0_i32 = arith.constant 0 : i32
    %c0_i32_0 = arith.constant 0 : i32
    %c0_i32_1 = arith.constant 0 : i32
    return %c0_i32, %c0_i32_0 : i32, i32
  }
}

</mosaic_0001>

<bundles_post_ra>
// kernel: tpu_custom_call.1
= control target key start
LH: loop header
LB: loop body
LE: loop exit
PB: predicated region body
PF: predicated region fallthrough
CT: control target
= control target key end

     0   :  { %11 = vsyncpa [#allocation8], 0  ;;  %s2313_s0 = inlined_call_operand.hbm [shape: f32[8,8,128], index: 0, kind: input, shape index: {}]   ;;  %s2314_s1 = inlined_call_operand.hbm [shape: f32[128,128], index: 1, kind: input, shape index: {}]   ;;  %s2315_s2 = inlined_call_operand.hbm [shape: f32[8,128], index: 2, kind: input, shape index: {}]   ;;  %s2316_s3 = inlined_call_operand.hbm [shape: f32[8,128], index: 3, kind: input, shape index: {}]   ;;  %s2317_s4 = inlined_call_operand.hbm [shape: f32[8,128], index: 4, kind: input, shape index: {}]   ;;  %s2318_s5 = inlined_call_operand.vmem [shape: f32[8,128], index: 5, kind: input, shape index: {}]   ;;  %s2319_s6 = inlined_call_operand.hbm [shape: f32[8,128], index: 6, kind: output, shape index: {}]  }
   0x1   :  { %12 = vsyncpa [#allocation11], 0 }
   0x2   :  { %13 = vsyncpa [#allocation14], 0 }
   0x3   :  { %14 = vsyncpa [#allocation9], 0  ;;  %s1796_s21 = smov [#allocation10]   ;;  %s1797_s23 = smov [#allocation13]  }
   0x4   :  { %s32_s22 = sshll.u32 %s1796_s21, 4  ;;  %s55_s24 = sshll.u32 %s1797_s23, 4  ;;  %s33_s22 = int_to_ptr.vmem [resolvable:$true] %s32_s22  ;;  %s56_s24 = int_to_ptr.vmem [resolvable:$true] %s55_s24 }
   0x5   :  { %s1676_s25 = scalar_lea.vmem %s33_s22, 2048  ;;  %p1681_p1 = scmp.lt.s32.totalorder %s33_s22, %s33_s22 }
   0x6   :  { %p1677_p0 = scmp.ne.s32.totalorder %s33_s22, %s1676_s25  ;;  %p1682_p2 = scmp.lt.s32.totalorder %s1676_s25, %s1676_s25 }
   0x8   :  { %p1683_p3 = por %p1682_p2, %p1681_p1 }
   0xa   :  { %p1684_p4 = pnand %p1683_p3, %p1677_p0 }
   0xc   :  { %1687 = shalt.err (!%p1684_p4)
}
   0xd   :  { %s1798_s26 = smov 128   ;;  %s1799_s27 = smov 8  }
   0xe   :  { %38 = dma.hbm_to_vmem [thread:$0]  %s2314_s1, 2048, %s33_s22, [#allocation11], %s1798_s26, %s1798_s26, %s1799_s27  }
   0xf   :  { %s1696_s30 = scalar_lea.vmem %s56_s24, 128  ;;  %p1701_p6 = scmp.lt.s32.totalorder %s56_s24, %s56_s24 }
  0x10   :  { %p1697_p5 = scmp.ne.s32.totalorder %s56_s24, %s1696_s30  ;;  %p1702_p7 = scmp.lt.s32.totalorder %s1696_s30, %s1696_s30 }
  0x12   :  { %p1703_p8 = por %p1702_p7, %p1701_p6 }
  0x14   :  { %p1704_p9 = pnand %p1703_p8, %p1697_p5 }
  0x16   :  { %1707 = shalt.err (!%p1704_p9)
}
  0x17   :  { %58 = dma.hbm_to_vmem [thread:$0]  %s2316_s3, 128, %s56_s24, [#allocation14]  }
  0x18   :  { %s1800_s9 = smov [#allocation7]   ;;  %s1801_s11 = smov [#allocation12]  }
  0x19   :  { %s20_s10 = sshll.u32 %s1800_s9, 4  ;;  %s45_s12 = sshll.u32 %s1801_s11, 4  ;;  %s21_s10 = int_to_ptr.vmem [resolvable:$true] %s20_s10  ;;  %s46_s12 = int_to_ptr.vmem [resolvable:$true] %s45_s12 }
  0x1a   :  { %s1716_s13 = scalar_lea.vmem %s21_s10, 1024  ;;  %p1721_p11 = scmp.lt.s32.totalorder %s21_s10, %s21_s10 }
  0x1b   :  { %p1717_p10 = scmp.ne.s32.totalorder %s21_s10, %s1716_s13  ;;  %p1722_p12 = scmp.lt.s32.totalorder %s1716_s13, %s1716_s13 }
  0x1d   :  { %p1723_p13 = por %p1722_p12, %p1721_p11 }
  0x1f   :  { %p1724_p0 = pnand %p1723_p13, %p1717_p10 }
  0x21   :  { %1727 = shalt.err (!%p1724_p0)
}
  0x22   :  { %26 = dma.hbm_to_vmem [thread:$0]  %s2313_s0, 1024, %s21_s10, [#allocation8], %s1798_s26, %s1798_s26, %s1799_s27  }
  0x23   :  { %s1736_s15 = scalar_lea.vmem %s46_s12, 128  ;;  %p1741_p2 = scmp.lt.s32.totalorder %s46_s12, %s46_s12 }
  0x24   :  { %p1737_p1 = scmp.ne.s32.totalorder %s46_s12, %s1736_s15  ;;  %p1742_p3 = scmp.lt.s32.totalorder %s1736_s15, %s1736_s15 }
  0x26   :  { %p1743_p4 = por %p1742_p3, %p1741_p2 }
  0x28   :  { %p1744_p5 = pnand %p1743_p4, %p1737_p1 }
  0x2a   :  { %1747 = shalt.err (!%p1744_p5)
}
  0x2b   :  { %48 = dma.hbm_to_vmem [thread:$0]  %s2315_s2, 128, %s46_s12, [#allocation11]  }
  0x2c   :  { %s1802_s17 = smov [#allocation15]  }
  0x2d   :  { %s65_s18 = sshll.u32 %s1802_s17, 4  ;;  %s66_s18 = int_to_ptr.vmem [resolvable:$true] %s65_s18 }
  0x2e   :  { %s1756_s19 = scalar_lea.vmem %s66_s18, 128  ;;  %p1761_p7 = scmp.lt.s32.totalorder %s66_s18, %s66_s18 }
  0x2f   :  { %p1757_p6 = scmp.ne.s32.totalorder %s66_s18, %s1756_s19  ;;  %p1762_p8 = scmp.lt.s32.totalorder %s1756_s19, %s1756_s19 }
  0x31   :  { %p1763_p9 = por %p1762_p8, %p1761_p7 }
  0x33   :  { %p1764_p10 = pnand %p1763_p9, %p1757_p6 }
  0x35   :  { %1767 = shalt.err (!%p1764_p10)
}
  0x36   :  { %68 = dma.hbm_to_vmem [thread:$0]  %s2317_s4, 128, %s66_s18, [#allocation14]  }
  0x37   :  { %1788 = dma.done.wait [#allocation8], 1024  }
  0x38   :  { %1789 = vsyncadd [#allocation8], 4294966272 }
  0x39   :  { %1790 = dma.done.wait [#allocation11], 2176  }
  0x3a   :  { %1791 = vsyncadd [#allocation11], 4294965120 }
  0x3b   :  { %1792 = dma.done.wait [#allocation14], 256  }
  0x3c   :  { %1793 = vsyncadd [#allocation14], 4294967040  ;;  %v99_v0 = vlaneseq  ;;  %v90_v3 = vld [vmem:[#allocation12] sm:$0xff]  ;;  %v92_v4 = vld [vmem:[#allocation13] sm:$0xff]  ;;  %v1803_v14 = vmov 0.0   ;;  %vm1804_vm3 = vmmov 0  }
  0x3d   :  { %v130_v5 = vmul.f32 0.5, %v92_v4  ;;  %v131_v6 = vsub.f32 1.0, %v90_v3  ;;  %v129_v7 = vld [vmem:[#allocation7] sm:$0xff]  ;;  %v1877_v13 = vld [vmem:[#allocation10 + $0x78] sm:$0xff]  ;;  %1266 = vmatprep.subr.mxu0 %v1803_v14  ;;  %v1880_v15 = vld [vmem:[#allocation10 + $0x70] sm:$0xff]  ;;  %1301 = vmatprep.subr.mxu1 %v1803_v14  ;;  %v1805_v42 = vmov 1.0  }
  0x3e   :  { %v1857_v1 = vshrl.u32 %v99_v0, 7  ;;  %v1859_v2 = vand.u32 127, %v99_v0  ;;  %1267 = vmatpush3.msra.mxu0 %v1877_v13  ;;  %1302 = vmatpush3.msra.mxu1 %v1877_v13  ;;  %v1886_v16 = vld [vmem:[#allocation10 + $0x68] sm:$0xff]  ;;  %v1892_v17 = vld [vmem:[#allocation10 + $0x60] sm:$0xff]  ;;  %v1898_v18 = vld [vmem:[#allocation10 + $0x58] sm:$0xff] }
  0x3f   :  { %v132_v8 = vmul.f32 %v131_v6, %v130_v5  ;;  %1268 = vmatprep.subr.mxu0 %v1803_v14  ;;  %1303 = vmatprep.subr.mxu1 %v1803_v14  ;;  %v1904_v19 = vld [vmem:[#allocation10 + $0x50] sm:$0xff]  ;;  %v1910_v20 = vld [vmem:[#allocation10 + $0x48] sm:$0xff]  ;;  %v1916_v21 = vld [vmem:[#allocation10 + $0x40] sm:$0xff] }
  0x40   :  { %vm101_vm0 = vcmp.lt.s32.totalorder %v1857_v1, 2  ;;  %vm104_vm1 = vcmp.lt.s32.totalorder %v1859_v2, 32  ;;  %1269 = vmatpush3.msra.mxu0 %v1880_v15  ;;  %1304 = vmatpush3.msra.mxu1 %v1880_v15  ;;  %v1922_v22 = vld [vmem:[#allocation10 + $0x38] sm:$0xff]  ;;  %v1928_v23 = vld [vmem:[#allocation10 + $0x30] sm:$0xff]  ;;  %v1934_v24 = vld [vmem:[#allocation10 + $0x28] sm:$0xff]  ;;  %vm106_vm5 = vcmp.lt.s32.totalorder %v1859_v2, 8 }
  0x41   :  { %v1863_v9 = vadd.f32 %v132_v8, %v129_v7  ;;  %vm1867_vm2 = vmand %vm101_vm0, %vm104_vm1  ;;  %1270 = vmatprep.subr.mxu0 %v1803_v14  ;;  %1305 = vmatprep.subr.mxu1 %v1803_v14  ;;  %v1940_v25 = vld [vmem:[#allocation10 + $0x20] sm:$0xff]  ;;  %v1946_v26 = vld [vmem:[#allocation10 + $0x18] sm:$0xff] }
  0x42   :  { %1271 = vmatpush3.msra.mxu0 %v1886_v16  ;;  %1306 = vmatpush3.msra.mxu1 %v1886_v16  ;;  %v1957_v27 = vld [vmem:[#allocation10 + $0x10] sm:$0xff]  ;;  %v1962_v29 = vld [vmem:[#allocation10 + $0x8] sm:$0xff]  ;;  %v1968_v31 = vld [vmem:[#allocation10] sm:$0xff] }
  0x43   :  { %v1872_v11 = vmul.f32 1.2, %v1863_v9  ;;  %1272 = vmatprep.subr.mxu0 %v1803_v14  ;;  %1307 = vmatprep.subr.mxu1 %v1803_v14  ;;  %v249_v40 = vmul.f32 0.5, %v1863_v9  ;;  %v248_v44 = vld [vmem:[#allocation7 + $0x8] sm:$0xff]  ;;  %v94_v49 = vld [vmem:[#allocation15] sm:$0xff]  ;;  %v96_v50 = vld [vmem:[%s2318_s5] sm:$0xff] }
  0x44   :  { %1273 = vmatpush3.msra.mxu0 %v1892_v17  ;;  %1308 = vmatpush3.msra.mxu1 %v1892_v17  ;;  %v223_v51 = vmul.f32 0.5, %v96_v50  ;;  %v224_v52 = vsub.f32 1.0, %v94_v49  ;;  %vm2033_vm6 = vmand %vm101_vm0, %vm106_vm5 }
  0x45   :  { %v135_v12 = vsel %vm1867_vm2, %v1872_v11, -inf  ;;  %1274 = vmatprep.subr.mxu0 %v1803_v14  ;;  %1309 = vmatprep.subr.mxu1 %v1803_v14 }
  0x46   :  { %136 = vmax.xlane.f32.xlu0 %v135_v12  ;;  %1275 = vmatpush3.msra.mxu0 %v1898_v18  ;;  %v225_v53 = vmul.f32 %v224_v52, %v223_v51 }
  0x47   :  { %1310 = vmatpush3.msra.mxu1 %v1898_v18  ;;  %1276 = vmatprep.subr.mxu0 %v1803_v14 }
  0x48   :  { %1311 = vmatprep.subr.mxu1 %v1803_v14  ;;  %1277 = vmatpush3.msra.mxu0 %v1904_v19 }
  0x49   :  { %1312 = vmatpush3.msra.mxu1 %v1904_v19  ;;  %1278 = vmatprep.subr.mxu0 %v1803_v14 }
  0x4a   :  { %1313 = vmatprep.subr.mxu1 %v1803_v14  ;;  %1279 = vmatpush3.msra.mxu0 %v1910_v20 }
  0x4b   :  { %1314 = vmatpush3.msra.mxu1 %v1910_v20  ;;  %1280 = vmatprep.subr.mxu0 %v1803_v14 }
  0x4c   :  { %1315 = vmatprep.subr.mxu1 %v1803_v14  ;;  %1281 = vmatpush3.msra.mxu0 %v1916_v21 }
  0x4d   :  { %1316 = vmatpush3.msra.mxu1 %v1916_v21  ;;  %1282 = vmatprep.subr.mxu0 %v1803_v14 }
  0x4e   :  { %1317 = vmatprep.subr.mxu1 %v1803_v14  ;;  %1283 = vmatpush3.msra.mxu0 %v1922_v22 }
  0x4f   :  { %1318 = vmatpush3.msra.mxu1 %v1922_v22  ;;  %1284 = vmatprep.subr.mxu0 %v1803_v14 }
  0x50   :  { %1319 = vmatprep.subr.mxu1 %v1803_v14  ;;  %1285 = vmatpush3.msra.mxu0 %v1928_v23 }
  0x51   :  { %1320 = vmatpush3.msra.mxu1 %v1928_v23  ;;  %1286 = vmatprep.subr.mxu0 %v1803_v14 }
  0x52   :  { %1321 = vmatprep.subr.mxu1 %v1803_v14  ;;  %1287 = vmatpush3.msra.mxu0 %v1934_v24 }
  0x53   :  { %1322 = vmatpush3.msra.mxu1 %v1934_v24  ;;  %1288 = vmatprep.subr.mxu0 %v1803_v14 }
  0x54   :  { %1323 = vmatprep.subr.mxu1 %v1803_v14  ;;  %1289 = vmatpush3.msra.mxu0 %v1940_v25 }
  0x55   :  { %1324 = vmatpush3.msra.mxu1 %v1940_v25  ;;  %1290 = vmatprep.subr.mxu0 %v1803_v14 }
  0x56   :  { %1325 = vmatprep.subr.mxu1 %v1803_v14  ;;  %1291 = vmatpush3.msra.mxu0 %v1946_v26 }
  0x57   :  { %1326 = vmatpush3.msra.mxu1 %v1946_v26  ;;  %1292 = vmatprep.subr.mxu0 %v1803_v14 }
  0x58   :  { %1327 = vmatprep.subr.mxu1 %v1803_v14  ;;  %1293 = vmatpush3.msra.mxu0 %v1957_v27 }
  0x59   :  { %1328 = vmatpush3.msra.mxu1 %v1957_v27  ;;  %1294 = vmatprep.subr.mxu0 %v1803_v14 }
  0x5a   :  { %1329 = vmatprep.subr.mxu1 %v1803_v14  ;;  %1295 = vmatpush3.msra.mxu0 %v1962_v29 }
  0x5b   :  { %1330 = vmatpush3.msra.mxu1 %v1962_v29  ;;  %1296 = vmatprep.subr.mxu0 %v1803_v14 }
  0x5c   :  { %1331 = vmatprep.subr.mxu1 %v1803_v14  ;;  %1297 = vmatpush3.msra.mxu0 %v1968_v31 }
  0x5d   :  { %1298 = vmatprep.mubr.msk.f32.mxu0 %vm1804_vm3, %v1803_v14  ;;  %1332 = vmatpush3.msra.mxu1 %v1968_v31 }
  0x5e   :  { %1333 = vmatprep.mubr.msk.f32.mxu1 %vm1804_vm3, %v1803_v14  ;;  %1336 = vmatprep.subr.mxu0 %v1803_v14 }
  0x5f   :  { %1371 = vmatprep.subr.mxu1 %v1803_v14 }
  0xcf   :  { %v137_v28 = vpop.xlane.xlu0 %136 }
  0xd0   :  { %v138_v30 = vrot.slane %v137_v28, 4 }
  0xd2   :  { %v139_v32 = vmax.f32 %v137_v28, %v138_v30 }
  0xd4   :  { %v140_v33 = vrot.slane %v139_v32, 2 }
  0xd6   :  { %v141_v34 = vmax.f32 %v139_v32, %v140_v33 }
  0xd8   :  { %v142_v35 = vrot.slane %v141_v34, 1 }
  0xda   :  { %v143_v36 = vmax.f32 %v141_v34, %v142_v35 }
  0xdc   :  { %1546 = vpush %v143_v36  ;;  %v367_v36 = vld [vmem:[#allocation7 + $0x10] sm:$0xff] }
 0x10d   :  { %s1547_s2 = spop %1546 }
 0x10e   :  { %v145_v37 = vstv %s1547_s2 }
 0x10f   :  { %1621 = vtanh.f32 %v145_v37 }
 0x11c   :  { %v1622_v38 = vpop.eup %1621 }
 0x11d   :  { %1548 = vpush %v1622_v38 }
 0x14e   :  { %s1549_s4 = spop %1548 }
 0x14f   :  { %s148_s21 = smul.f32 0.3, %s1549_s4 }
 0x151   :  { %v149_v39 = vstv %s148_s21 }
 0x152   :  { %vm150_vm4 = vcmp.gt.f32.partialorder %v1872_v11, %v149_v39 }
 0x153   :  { %v1106_v41 = vsel %vm150_vm4, 1.0, %v1803_v14  ;;  %1299 = vmatmul.mubr.msk.f32.vlgmr.msra.gmra.mxu0 %vm150_vm4, %v1805_v42 }
 0x154   :  { %v250_v43 = vsub.f32 1.0, %v1106_v41  ;;  %1337 = vmatpush3.msra.mxu0 %v1877_v13  ;;  %1368 = vmatprep.mubr.msk.f32.mxu0 %vm1804_vm3, %v1803_v14 }
 0x155   :  { %1338 = vmatprep.subr.mxu0 %v1803_v14 }
 0x156   :  { %v251_v45 = vmul.f32 %v250_v43, %v249_v40  ;;  %1339 = vmatpush3.msra.mxu0 %v1880_v15 }
 0x157   :  { %1340 = vmatprep.subr.mxu0 %v1803_v14 }
 0x158   :  { %v1989_v46 = vadd.f32 %v251_v45, %v248_v44  ;;  %1341 = vmatpush3.msra.mxu0 %v1886_v16 }
 0x159   :  { %1342 = vmatprep.subr.mxu0 %v1803_v14 }
 0x15a   :  { %v1994_v47 = vmul.f32 1.2, %v1989_v46  ;;  %1343 = vmatpush3.msra.mxu0 %v1892_v17  ;;  %v368_v34 = vmul.f32 0.5, %v1989_v46 }
 0x15b   :  { %1344 = vmatprep.subr.mxu0 %v1803_v14 }
 0x15c   :  { %v254_v48 = vsel %vm1867_vm2, %v1994_v47, -inf  ;;  %1345 = vmatpush3.msra.mxu0 %v1898_v18 }
 0x15d   :  { %255 = vmax.xlane.f32.xlu1 %v254_v48  ;;  %1346 = vmatprep.subr.mxu0 %v1803_v14 }
 0x15e   :  { %1347 = vmatpush3.msra.mxu0 %v1904_v19 }
 0x15f   :  { %1348 = vmatprep.subr.mxu0 %v1803_v14 }
 0x160   :  { %1349 = vmatpush3.msra.mxu0 %v1910_v20 }
 0x161   :  { %1350 = vmatprep.subr.mxu0 %v1803_v14 }
 0x162   :  { %1351 = vmatpush3.msra.mxu0 %v1916_v21 }
 0x163   :  { %1352 = vmatprep.subr.mxu0 %v1803_v14 }
 0x164   :  { %1353 = vmatpush3.msra.mxu0 %v1922_v22 }
 0x165   :  { %1354 = vmatprep.subr.mxu0 %v1803_v14 }
 0x166   :  { %1355 = vmatpush3.msra.mxu0 %v1928_v23 }
 0x167   :  { %1356 = vmatprep.subr.mxu0 %v1803_v14 }
 0x168   :  { %1357 = vmatpush3.msra.mxu0 %v1934_v24 }
 0x169   :  { %1358 = vmatprep.subr.mxu0 %v1803_v14 }
 0x16a   :  { %1359 = vmatpush3.msra.mxu0 %v1940_v25 }
 0x16b   :  { %1360 = vmatprep.subr.mxu0 %v1803_v14 }
 0x16c   :  { %1361 = vmatpush3.msra.mxu0 %v1946_v26 }
 0x16d   :  { %1362 = vmatprep.subr.mxu0 %v1803_v14 }
 0x16e   :  { %1363 = vmatpush3.msra.mxu0 %v1957_v27 }
 0x16f   :  { %1364 = vmatprep.subr.mxu0 %v1803_v14 }
 0x170   :  { %1365 = vmatpush3.msra.mxu0 %v1962_v29 }
 0x171   :  { %1366 = vmatprep.subr.mxu0 %v1803_v14 }
 0x172   :  { %1367 = vmatpush3.msra.mxu0 %v1968_v31 }
 0x173   :  { %1406 = vmatprep.subr.mxu0 %v1803_v14 }
 0x1e6   :  { %v256_v1 = vpop.xlane.xlu1 %255 }
 0x1e7   :  { %v257_v4 = vrot.slane %v256_v1, 4 }
 0x1e9   :  { %v258_v5 = vmax.f32 %v256_v1, %v257_v4 }
 0x1eb   :  { %v259_v7 = vrot.slane %v258_v5, 2 }
 0x1ed   :  { %v260_v8 = vmax.f32 %v258_v5, %v259_v7 }
 0x1ef   :  { %v261_v9 = vrot.slane %v260_v8, 1 }
 0x1f1   :  { %v262_v12 = vmax.f32 %v260_v8, %v261_v9 }
 0x213   :  { %v219_v54 = vpop.f32.mrf.mxu0 }
 0x214   :  { %v2029_v55 = vadd.f32 %v225_v53, %v219_v54 }
 0x215   :  { %v1300_v56 = vpop.f32.mrf.mxu0 }
 0x216   :  { %v2038_v58 = vmul.f32 1.2, %v2029_v55  ;;  %v342_v45 = vmul.f32 0.5, %v2029_v55 }
 0x218   :  { %v228_v59 = vsel %vm2033_vm6, %v2038_v58, -inf }
 0x219   :  { %229 = vmax.xlane.f32.xlu0 %v228_v59 }
 0x2a2   :  { %v230_v60 = vpop.xlane.xlu0 %229 }
 0x2a3   :  { %v231_v61 = vrot.slane %v230_v60, 4 }
 0x2a5   :  { %v232_v62 = vmax.f32 %v230_v60, %v231_v61 }
 0x2a7   :  { %v233_v63 = vrot.slane %v232_v62, 2 }
 0x2a9   :  { %v234_v0 = vmax.f32 %v232_v62, %v233_v63 }
 0x2ab   :  { %v235_v2 = vrot.slane %v234_v0, 1 }
 0x2ad   :  { %v236_v3 = vmax.f32 %v234_v0, %v235_v2 }
 0x2af   :  { %1550 = vpush %v236_v3 }
 0x2e0   :  { %s1551_s5 = spop %1550 }
 0x2e1   :  { %v238_v6 = vstv %s1551_s5 }
 0x2e2   :  { %1623 = vtanh.f32 %v238_v6 }
 0x2ef   :  { %v1624_v11 = vpop.eup %1623 }
 0x2f0   :  { %1552 = vpush %v1624_v11 }
 0x2f1   :  { %1554 = vpush %v262_v12 }
 0x321   :  { %s2043_s24 = spop %1552 }
 0x322   :  { %s1555_s25 = spop %1554  ;;  %s241_s28 = smul.f32 0.3, %s2043_s24 }
 0x323   :  { %v264_v28 = vstv %s1555_s25 }
 0x324   :  { %1625 = vtanh.f32 %v264_v28  ;;  %v242_v41 = vstv %s241_s28 }
 0x325   :  { %vm243_vm8 = vcmp.gt.f32.partialorder %v2038_v58, %v242_v41 }
 0x326   :  { %v2094_v43 = vsel %vm243_vm8, 1.0, %v1803_v14 }
 0x327   :  { %v343_v44 = vsub.f32 1.0, %v2094_v43 }
 0x329   :  { %v344_v46 = vmul.f32 %v343_v44, %v342_v45 }
 0x331   :  { %v1626_v30 = vpop.eup %1625 }
 0x332   :  { %1556 = vpush %v1626_v30 }
 0x363   :  { %s1557_s26 = spop %1556 }
 0x364   :  { %s267_s27 = smul.f32 0.3, %s1557_s26 }
 0x366   :  { %v268_v32 = vstv %s267_s27 }
 0x367   :  { %vm269_vm7 = vcmp.gt.f32.partialorder %v1994_v47, %v268_v32 }
 0x368   :  { %v1109_v33 = vsel %vm269_vm7, 1.0, %v1803_v14  ;;  %1334 = vmatmul.mubr.msk.f32.vlgmr.msra.gmra.mxu1 %vm269_vm7, %v1805_v42 }
 0x369   :  { %v369_v35 = vsub.f32 1.0, %v1109_v33  ;;  %1372 = vmatpush3.msra.mxu1 %v1877_v13  ;;  %1403 = vmatprep.mubr.msk.f32.mxu1 %vm1804_vm3, %v1803_v14 }
 0x36a   :  { %1373 = vmatprep.subr.mxu1 %v1803_v14 }
 0x36b   :  { %v370_v37 = vmul.f32 %v369_v35, %v368_v34  ;;  %1374 = vmatpush3.msra.mxu1 %v1880_v15  ;;  %v486_v34 = vld [vmem:[#allocation7 + $0x18] sm:$0xff] }
 0x36c   :  { %1375 = vmatprep.subr.mxu1 %v1803_v14 }
 0x36d   :  { %v2055_v38 = vadd.f32 %v370_v37, %v367_v36  ;;  %1376 = vmatpush3.msra.mxu1 %v1886_v16 }
 0x36e   :  { %1377 = vmatprep.subr.mxu1 %v1803_v14 }
 0x36f   :  { %v2060_v39 = vmul.f32 1.2, %v2055_v38  ;;  %1378 = vmatpush3.msra.mxu1 %v1892_v17  ;;  %v487_v32 = vmul.f32 0.5, %v2055_v38 }
 0x370   :  { %1379 = vmatprep.subr.mxu1 %v1803_v14 }
 0x371   :  { %v373_v40 = vsel %vm1867_vm2, %v2060_v39, -inf  ;;  %1380 = vmatpush3.msra.mxu1 %v1898_v18 }
 0x372   :  { %374 = vmax.xlane.f32.xlu0 %v373_v40  ;;  %1381 = vmatprep.subr.mxu1 %v1803_v14 }
 0x373   :  { %1382 = vmatpush3.msra.mxu1 %v1904_v19 }
 0x374   :  { %1383 = vmatprep.subr.mxu1 %v1803_v14 }
 0x375   :  { %1384 = vmatpush3.msra.mxu1 %v1910_v20 }
 0x376   :  { %1385 = vmatprep.subr.mxu1 %v1803_v14 }
 0x377   :  { %1386 = vmatpush3.msra.mxu1 %v1916_v21 }
 0x378   :  { %1387 = vmatprep.subr.mxu1 %v1803_v14 }
 0x379   :  { %1388 = vmatpush3.msra.mxu1 %v1922_v22 }
 0x37a   :  { %1389 = vmatprep.subr.mxu1 %v1803_v14 }
 0x37b   :  { %1390 = vmatpush3.msra.mxu1 %v1928_v23 }
 0x37c   :  { %1391 = vmatprep.subr.mxu1 %v1803_v14 }
 0x37d   :  { %1392 = vmatpush3.msra.mxu1 %v1934_v24 }
 0x37e   :  { %1393 = vmatprep.subr.mxu1 %v1803_v14 }
 0x37f   :  { %1394 = vmatpush3.msra.mxu1 %v1940_v25 }
 0x380   :  { %1395 = vmatprep.subr.mxu1 %v1803_v14 }
 0x381   :  { %1396 = vmatpush3.msra.mxu1 %v1946_v26 }
 0x382   :  { %1397 = vmatprep.subr.mxu1 %v1803_v14 }
 0x383   :  { %1398 = vmatpush3.msra.mxu1 %v1957_v27 }
 0x384   :  { %1399 = vmatprep.subr.mxu1 %v1803_v14 }
 0x385   :  { %1400 = vmatpush3.msra.mxu1 %v1962_v29 }
 0x386   :  { %1401 = vmatprep.subr.mxu1 %v1803_v14 }
 0x387   :  { %1402 = vmatpush3.msra.mxu1 %v1968_v31 }
 0x388   :  { %1441 = vmatprep.subr.mxu1 %v1803_v14 }
 0x3fb   :  { %v375_v61 = vpop.xlane.xlu0 %374 }
 0x3fc   :  { %v376_v62 = vrot.slane %v375_v61, 4 }
 0x3fe   :  { %v377_v55 = vmax.f32 %v375_v61, %v376_v62 }
 0x400   :  { %v378_v0 = vrot.slane %v377_v55, 2 }
 0x402   :  { %v379_v2 = vmax.f32 %v377_v55, %v378_v0 }
 0x404   :  { %v380_v3 = vrot.slane %v379_v2, 1 }
 0x406   :  { %v381_v4 = vmax.f32 %v379_v2, %v380_v3 }
 0x428   :  { %v338_v47 = vpop.f32.mrf.mxu1 }
 0x429   :  { %v345_v48 = vadd.f32 %v344_v46, %v338_v47 }
 0x42a   :  { %v1335_v49 = vpop.f32.mrf.mxu1 }
 0x42b   :  { %v346_v50 = vmul.f32 1.2, %v345_v48  ;;  %v461_v8 = vmul.f32 0.5, %v345_v48 }
 0x42d   :  { %v347_v51 = vsel %vm2033_vm6, %v346_v50, -inf }
 0x42e   :  { %348 = vmax.xlane.f32.xlu1 %v347_v51 }
 0x4b7   :  { %v349_v52 = vpop.xlane.xlu1 %348 }
 0x4b8   :  { %v350_v53 = vrot.slane %v349_v52, 4 }
 0x4ba   :  { %v351_v54 = vmax.f32 %v349_v52, %v350_v53 }
 0x4bc   :  { %v352_v56 = vrot.slane %v351_v54, 2 }
 0x4be   :  { %v353_v58 = vmax.f32 %v351_v54, %v352_v56 }
 0x4c0   :  { %v354_v59 = vrot.slane %v353_v58, 1 }
 0x4c2   :  { %v355_v60 = vmax.f32 %v353_v58, %v354_v59 }
 0x4c4   :  { %1558 = vpush %v355_v60 }
 0x4f5   :  { %s1559_s29 = spop %1558 }
 0x4f6   :  { %v357_v63 = vstv %s1559_s29 }
 0x4f7   :  { %1627 = vtanh.f32 %v357_v63 }
 0x504   :  { %v1628_v1 = vpop.eup %1627 }
 0x505   :  { %1560 = vpush %v1628_v1 }
 0x506   :  { %1562 = vpush %v381_v4 }
 0x536   :  { %s1561_s30 = spop %1560 }
 0x537   :  { %s360_s7 = smul.f32 0.3, %s1561_s30  ;;  %s1563_s8 = spop %1562 }
 0x538   :  { %v383_v5 = vstv %s1563_s8 }
 0x539   :  { %v361_v6 = vstv %s360_s7  ;;  %1629 = vtanh.f32 %v383_v5 }
 0x53a   :  { %vm362_vm9 = vcmp.gt.f32.partialorder %v346_v50, %v361_v6 }
 0x53b   :  { %v2101_v7 = vsel %vm362_vm9, 1.0, %v1803_v14 }
 0x53c   :  { %v462_v9 = vsub.f32 1.0, %v2101_v7  ;;  %v365_v2 = vadd.f32 %v2101_v7, %v2094_v43 }
 0x53e   :  { %v463_v11 = vmul.f32 %v462_v9, %v461_v8 }
 0x546   :  { %v1630_v12 = vpop.eup %1629 }
 0x547   :  { %1564 = vpush %v1630_v12  ;;  %v605_v12 = vld [vmem:[#allocation7 + $0x20] sm:$0xff] }
 0x578   :  { %s1565_s9 = spop %1564 }
 0x579   :  { %s386_s10 = smul.f32 0.3, %s1565_s9 }
 0x57b   :  { %v387_v28 = vstv %s386_s10 }
 0x57c   :  { %vm388_vm10 = vcmp.gt.f32.partialorder %v2060_v39, %v387_v28 }
 0x57d   :  { %v1112_v30 = vsel %vm388_vm10, 1.0, %v1803_v14  ;;  %1369 = vmatmul.mubr.msk.f32.vlgmr.msra.gmra.mxu0 %vm388_vm10, %v1805_v42 }
 0x57e   :  { %v488_v33 = vsub.f32 1.0, %v1112_v30  ;;  %1407 = vmatpush3.msra.mxu0 %v1877_v13  ;;  %1438 = vmatprep.mubr.msk.f32.mxu0 %vm1804_vm3, %v1803_v14 }
 0x57f   :  { %1408 = vmatprep.subr.mxu0 %v1803_v14 }
 0x580   :  { %v489_v35 = vmul.f32 %v488_v33, %v487_v32  ;;  %1409 = vmatpush3.msra.mxu0 %v1880_v15 }
 0x581   :  { %1410 = vmatprep.subr.mxu0 %v1803_v14 }
 0x582   :  { %v2114_v36 = vadd.f32 %v489_v35, %v486_v34  ;;  %1411 = vmatpush3.msra.mxu0 %v1886_v16 }
 0x583   :  { %1412 = vmatprep.subr.mxu0 %v1803_v14 }
 0x584   :  { %v2119_v37 = vmul.f32 1.2, %v2114_v36  ;;  %1413 = vmatpush3.msra.mxu0 %v1892_v17  ;;  %v606_v43 = vmul.f32 0.5, %v2114_v36 }
 0x585   :  { %1414 = vmatprep.subr.mxu0 %v1803_v14 }
 0x586   :  { %v492_v38 = vsel %vm1867_vm2, %v2119_v37, -inf  ;;  %1415 = vmatpush3.msra.mxu0 %v1898_v18 }
 0x587   :  { %493 = vmax.xlane.f32.xlu0 %v492_v38  ;;  %1416 = vmatprep.subr.mxu0 %v1803_v14 }
 0x588   :  { %1417 = vmatpush3.msra.mxu0 %v1904_v19 }
 0x589   :  { %1418 = vmatprep.subr.mxu0 %v1803_v14 }
 0x58a   :  { %1419 = vmatpush3.msra.mxu0 %v1910_v20 }
 0x58b   :  { %1420 = vmatprep.subr.mxu0 %v1803_v14 }
 0x58c   :  { %1421 = vmatpush3.msra.mxu0 %v1916_v21 }
 0x58d   :  { %1422 = vmatprep.subr.mxu0 %v1803_v14 }
 0x58e   :  { %1423 = vmatpush3.msra.mxu0 %v1922_v22 }
 0x58f   :  { %1424 = vmatprep.subr.mxu0 %v1803_v14 }
 0x590   :  { %1425 = vmatpush3.msra.mxu0 %v1928_v23 }
 0x591   :  { %1426 = vmatprep.subr.mxu0 %v1803_v14 }
 0x592   :  { %1427 = vmatpush3.msra.mxu0 %v1934_v24 }
 0x593   :  { %1428 = vmatprep.subr.mxu0 %v1803_v14 }
 0x594   :  { %1429 = vmatpush3.msra.mxu0 %v1940_v25 }
 0x595   :  { %1430 = vmatprep.subr.mxu0 %v1803_v14 }
 0x596   :  { %1431 = vmatpush3.msra.mxu0 %v1946_v26 }
 0x597   :  { %1432 = vmatprep.subr.mxu0 %v1803_v14 }
 0x598   :  { %1433 = vmatpush3.msra.mxu0 %v1957_v27 }
 0x599   :  { %1434 = vmatprep.subr.mxu0 %v1803_v14 }
 0x59a   :  { %1435 = vmatpush3.msra.mxu0 %v1962_v29 }
 0x59b   :  { %1436 = vmatprep.subr.mxu0 %v1803_v14 }
 0x59c   :  { %1437 = vmatpush3.msra.mxu0 %v1968_v31 }
 0x59d   :  { %1476 = vmatprep.subr.mxu0 %v1803_v14 }
 0x610   :  { %v494_v53 = vpop.xlane.xlu0 %493 }
 0x611   :  { %v495_v54 = vrot.slane %v494_v53, 4 }
 0x613   :  { %v496_v56 = vmax.f32 %v494_v53, %v495_v54 }
 0x615   :  { %v497_v59 = vrot.slane %v496_v56, 2 }
 0x617   :  { %v498_v60 = vmax.f32 %v496_v56, %v497_v59 }
 0x619   :  { %v499_v61 = vrot.slane %v498_v60, 1 }
 0x61b   :  { %v500_v55 = vmax.f32 %v498_v60, %v499_v61 }
 0x63d   :  { %v457_v39 = vpop.f32.mrf.mxu0 }
 0x63e   :  { %v464_v40 = vadd.f32 %v463_v11, %v457_v39 }
 0x63f   :  { %v1370_v41 = vpop.f32.mrf.mxu0 }
 0x640   :  { %v465_v44 = vmul.f32 1.2, %v464_v40  ;;  %v580_v1 = vmul.f32 0.5, %v464_v40 }
 0x642   :  { %v466_v45 = vsel %vm2033_vm6, %v465_v44, -inf }
 0x643   :  { %467 = vmax.xlane.f32.xlu1 %v466_v45 }
 0x6cc   :  { %v468_v46 = vpop.xlane.xlu1 %467 }
 0x6cd   :  { %v469_v47 = vrot.slane %v468_v46, 4 }
 0x6cf   :  { %v470_v48 = vmax.f32 %v468_v46, %v469_v47 }
 0x6d1   :  { %v471_v49 = vrot.slane %v470_v48, 2 }
 0x6d3   :  { %v472_v50 = vmax.f32 %v470_v48, %v471_v49 }
 0x6d5   :  { %v473_v51 = vrot.slane %v472_v50, 1 }
 0x6d7   :  { %v474_v52 = vmax.f32 %v472_v50, %v473_v51 }
 0x6d9   :  { %1566 = vpush %v474_v52 }
 0x70a   :  { %s1567_s11 = spop %1566 }
 0x70b   :  { %v476_v58 = vstv %s1567_s11 }
 0x70c   :  { %1631 = vtanh.f32 %v476_v58 }
 0x719   :  { %v1632_v62 = vpop.eup %1631 }
 0x71a   :  { %1568 = vpush %v1632_v62 }
 0x71b   :  { %1570 = vpush %v500_v55 }
 0x74b   :  { %s1569_s12 = spop %1568 }
 0x74c   :  { %s479_s13 = smul.f32 0.3, %s1569_s12  ;;  %s1571_s1 = spop %1570 }
 0x74d   :  { %v502_v63 = vstv %s1571_s1  ;;  %s1806_s1 = smov [#allocation16]  }
 0x74e   :  { %v480_v0 = vstv %s479_s13  ;;  %1633 = vtanh.f32 %v502_v63 }
 0x74f   :  { %vm481_vm11 = vcmp.gt.f32.partialorder %v465_v44, %v480_v0 }
 0x750   :  { %v1114_v3 = vsel %vm481_vm11, 1.0, %v1803_v14 }
 0x751   :  { %v2155_v4 = vadd.f32 %v1114_v3, %v365_v2  ;;  %v581_v5 = vsub.f32 1.0, %v1114_v3 }
 0x753   :  { %v582_v6 = vmul.f32 %v581_v5, %v580_v1 }
 0x75b   :  { %v1634_v8 = vpop.eup %1633 }
 0x75c   :  { %1572 = vpush %v1634_v8 }
 0x78d   :  { %s1573_s14 = spop %1572 }
 0x78e   :  { %s505_s15 = smul.f32 0.3, %s1573_s14  ;;  %s1095_s14 = sshll.u32 %s1806_s1, 4  ;;  %s1096_s14 = int_to_ptr.vmem [resolvable:$true] %s1095_s14 }
 0x78f   :  { %p1773_p12 = scmp.lt.s32.totalorder %s1096_s14, %s1096_s14 }
 0x790   :  { %v506_v9 = vstv %s505_s15  ;;  %s1768_s15 = scalar_lea.vmem %s1096_s14, 128 }
 0x791   :  { %vm507_vm12 = vcmp.gt.f32.partialorder %v2119_v37, %v506_v9  ;;  %p1769_p11 = scmp.ne.s32.totalorder %s1096_s14, %s1768_s15  ;;  %p1774_p13 = scmp.lt.s32.totalorder %s1768_s15, %s1768_s15 }
 0x792   :  { %v1115_v11 = vsel %vm507_vm12, 1.0, %v1803_v14  ;;  %1404 = vmatmul.mubr.msk.f32.vlgmr.msra.gmra.mxu1 %vm507_vm12, %v1805_v42 }
 0x793   :  { %v607_v7 = vsub.f32 1.0, %v1115_v11  ;;  %1442 = vmatpush3.msra.mxu1 %v1877_v13  ;;  %1473 = vmatprep.mubr.msk.f32.mxu1 %vm1804_vm3, %v1803_v14  ;;  %p1775_p0 = por %p1774_p13, %p1773_p12 }
 0x794   :  { %1443 = vmatprep.subr.mxu1 %v1803_v14 }
 0x795   :  { %v608_v28 = vmul.f32 %v607_v7, %v606_v43  ;;  %1444 = vmatpush3.msra.mxu1 %v1880_v15  ;;  %p1776_p1 = pnand %p1775_p0, %p1769_p11 }
 0x796   :  { %1445 = vmatprep.subr.mxu1 %v1803_v14 }
 0x797   :  { %v2167_v30 = vadd.f32 %v608_v28, %v605_v12  ;;  %1446 = vmatpush3.msra.mxu1 %v1886_v16 }
 0x798   :  { %1447 = vmatprep.subr.mxu1 %v1803_v14 }
 0x799   :  { %v2172_v32 = vmul.f32 1.2, %v2167_v30  ;;  %1448 = vmatpush3.msra.mxu1 %v1892_v17  ;;  %v725_v5 = vmul.f32 0.5, %v2167_v30 }
 0x79a   :  { %1449 = vmatprep.subr.mxu1 %v1803_v14 }
 0x79b   :  { %v611_v33 = vsel %vm1867_vm2, %v2172_v32, -inf  ;;  %1450 = vmatpush3.msra.mxu1 %v1898_v18 }
 0x79c   :  { %612 = vmax.xlane.f32.xlu0 %v611_v33  ;;  %1451 = vmatprep.subr.mxu1 %v1803_v14 }
 0x79d   :  { %1452 = vmatpush3.msra.mxu1 %v1904_v19 }
 0x79e   :  { %1453 = vmatprep.subr.mxu1 %v1803_v14 }
 0x79f   :  { %1454 = vmatpush3.msra.mxu1 %v1910_v20 }
 0x7a0   :  { %1455 = vmatprep.subr.mxu1 %v1803_v14 }
 0x7a1   :  { %1456 = vmatpush3.msra.mxu1 %v1916_v21 }
 0x7a2   :  { %1457 = vmatprep.subr.mxu1 %v1803_v14 }
 0x7a3   :  { %1458 = vmatpush3.msra.mxu1 %v1922_v22 }
 0x7a4   :  { %1459 = vmatprep.subr.mxu1 %v1803_v14 }
 0x7a5   :  { %1460 = vmatpush3.msra.mxu1 %v1928_v23 }
 0x7a6   :  { %1461 = vmatprep.subr.mxu1 %v1803_v14 }
 0x7a7   :  { %1462 = vmatpush3.msra.mxu1 %v1934_v24 }
 0x7a8   :  { %1463 = vmatprep.subr.mxu1 %v1803_v14 }
 0x7a9   :  { %1464 = vmatpush3.msra.mxu1 %v1940_v25 }
 0x7aa   :  { %1465 = vmatprep.subr.mxu1 %v1803_v14 }
 0x7ab   :  { %1466 = vmatpush3.msra.mxu1 %v1946_v26 }
 0x7ac   :  { %1467 = vmatprep.subr.mxu1 %v1803_v14 }
 0x7ad   :  { %1468 = vmatpush3.msra.mxu1 %v1957_v27 }
 0x7ae   :  { %1469 = vmatprep.subr.mxu1 %v1803_v14 }
 0x7af   :  { %1470 = vmatpush3.msra.mxu1 %v1962_v29 }
 0x7b0   :  { %1471 = vmatprep.subr.mxu1 %v1803_v14 }
 0x7b1   :  { %1472 = vmatpush3.msra.mxu1 %v1968_v31 }
 0x7b2   :  { %1511 = vmatprep.subr.mxu1 %v1803_v14 }
 0x825   :  { %v613_v48 = vpop.xlane.xlu0 %612 }
 0x826   :  { %v614_v49 = vrot.slane %v613_v48, 4 }
 0x828   :  { %v615_v50 = vmax.f32 %v613_v48, %v614_v49  ;;  %v1653_v48 = vld [vmem:[#allocation10 + $0x78] sm:$0xff]  ;;  %v843_v49 = vld [vmem:[#allocation7 + $0x30] sm:$0xff] }
 0x82a   :  { %v616_v52 = vrot.slane %v615_v50, 2 }
 0x82c   :  { %v617_v53 = vmax.f32 %v615_v50, %v616_v52 }
 0x82e   :  { %v618_v54 = vrot.slane %v617_v53, 1 }
 0x830   :  { %v619_v58 = vmax.f32 %v617_v53, %v618_v54  ;;  %v1655_v53 = vld [vmem:[#allocation10 + $0x68] sm:$0xff] }
 0x852   :  { %v576_v34 = vpop.f32.mrf.mxu1 }
 0x853   :  { %v583_v35 = vadd.f32 %v582_v6, %v576_v34 }
 0x854   :  { %v1405_v36 = vpop.f32.mrf.mxu1 }
 0x855   :  { %v584_v37 = vmul.f32 1.2, %v583_v35  ;;  %v699_v62 = vmul.f32 0.5, %v583_v35 }
 0x857   :  { %v585_v38 = vsel %vm2033_vm6, %v584_v37, -inf }
 0x858   :  { %586 = vmax.xlane.f32.xlu1 %v585_v38 }
 0x8e1   :  { %v587_v39 = vpop.xlane.xlu1 %586 }
 0x8e2   :  { %v588_v40 = vrot.slane %v587_v39, 4 }
 0x8e4   :  { %v589_v41 = vmax.f32 %v587_v39, %v588_v40 }
 0x8e6   :  { %v590_v44 = vrot.slane %v589_v41, 2 }
 0x8e8   :  { %v591_v45 = vmax.f32 %v589_v41, %v590_v44 }
 0x8ea   :  { %v592_v46 = vrot.slane %v591_v45, 1 }
 0x8ec   :  { %v593_v47 = vmax.f32 %v591_v45, %v592_v46 }
 0x8ee   :  { %1574 = vpush %v593_v47 }
 0x91f   :  { %s1575_s3 = spop %1574 }
 0x920   :  { %v595_v51 = vstv %s1575_s3 }
 0x921   :  { %1635 = vtanh.f32 %v595_v51  ;;  %v1654_v51 = vld [vmem:[#allocation10 + $0x70] sm:$0xff] }
 0x92e   :  { %v1636_v56 = vpop.eup %1635 }
 0x92f   :  { %1576 = vpush %v1636_v56  ;;  %v1656_v56 = vld [vmem:[#allocation10 + $0x60] sm:$0xff] }
 0x930   :  { %1578 = vpush %v619_v58 }
 0x960   :  { %s1577_s16 = spop %1576 }
 0x961   :  { %s598_s17 = smul.f32 0.3, %s1577_s16  ;;  %s1579_s18 = spop %1578 }
 0x962   :  { %v621_v59 = vstv %s1579_s18 }
 0x963   :  { %v599_v60 = vstv %s598_s17  ;;  %1637 = vtanh.f32 %v621_v59  ;;  %v1657_v59 = vld [vmem:[#allocation10 + $0x58] sm:$0xff] }
 0x964   :  { %vm600_vm13 = vcmp.gt.f32.partialorder %v584_v37, %v599_v60  ;;  %v1658_v60 = vld [vmem:[#allocation10 + $0x50] sm:$0xff] }
 0x965   :  { %v1117_v61 = vsel %vm600_vm13, 1.0, %v1803_v14 }
 0x966   :  { %v2207_v55 = vadd.f32 %v1117_v61, %v2155_v4  ;;  %v700_v63 = vsub.f32 1.0, %v1117_v61  ;;  %v724_v4 = vld [vmem:[#allocation7 + $0x28] sm:$0xff] }
 0x967   :  { %v1659_v61 = vld [vmem:[#allocation10 + $0x48] sm:$0xff] }
 0x968   :  { %v701_v0 = vmul.f32 %v700_v63, %v699_v62  ;;  %v1660_v62 = vld [vmem:[#allocation10 + $0x40] sm:$0xff]  ;;  %v1662_v63 = vld [vmem:[#allocation10 + $0x30] sm:$0xff] }
 0x970   :  { %v1638_v2 = vpop.eup %1637 }
 0x971   :  { %1580 = vpush %v1638_v2  ;;  %v1664_v2 = vld [vmem:[#allocation10 + $0x20] sm:$0xff] }
 0x9a2   :  { %s1581_s19 = spop %1580 }
 0x9a3   :  { %s624_s0 = smul.f32 0.3, %s1581_s19 }
 0x9a5   :  { %v625_v3 = vstv %s624_s0 }
 0x9a6   :  { %vm626_vm14 = vcmp.gt.f32.partialorder %v2172_v32, %v625_v3  ;;  %v1665_v3 = vld [vmem:[#allocation10 + $0x18] sm:$0xff] }
 0x9a7   :  { %v1118_v1 = vsel %vm626_vm14, 1.0, %v1803_v14  ;;  %1439 = vmatmul.mubr.msk.f32.vlgmr.msra.gmra.mxu0 %vm626_vm14, %v1805_v42 }
 0x9a8   :  { %v726_v6 = vsub.f32 1.0, %v1118_v1  ;;  %1477 = vmatpush3.msra.mxu0 %v1877_v13  ;;  %1508 = vmatprep.mubr.msk.f32.mxu0 %vm1804_vm3, %v1803_v14  ;;  %v1666_v1 = vld [vmem:[#allocation10 + $0x10] sm:$0xff] }
 0x9a9   :  { %1478 = vmatprep.subr.mxu0 %v1803_v14 }
 0x9aa   :  { %v727_v8 = vmul.f32 %v726_v6, %v725_v5  ;;  %1479 = vmatpush3.msra.mxu0 %v1880_v15  ;;  %v1667_v5 = vld [vmem:[#allocation10 + $0x8] sm:$0xff] }
 0x9ab   :  { %1480 = vmatprep.subr.mxu0 %v1803_v14 }
 0x9ac   :  { %v2219_v9 = vadd.f32 %v727_v8, %v724_v4  ;;  %1481 = vmatpush3.msra.mxu0 %v1886_v16 }
 0x9ad   :  { %1482 = vmatprep.subr.mxu0 %v1803_v14 }
 0x9ae   :  { %v2224_v11 = vmul.f32 1.2, %v2219_v9  ;;  %1483 = vmatpush3.msra.mxu0 %v1892_v17  ;;  %v844_v46 = vmul.f32 0.5, %v2219_v9 }
 0x9af   :  { %1484 = vmatprep.subr.mxu0 %v1803_v14 }
 0x9b0   :  { %v730_v13 = vsel %vm1867_vm2, %v2224_v11, -inf  ;;  %1485 = vmatpush3.msra.mxu0 %v1898_v18 }
 0x9b1   :  { %731 = vmax.xlane.f32.xlu0 %v730_v13  ;;  %1486 = vmatprep.subr.mxu0 %v1803_v14 }
 0x9b2   :  { %1487 = vmatpush3.msra.mxu0 %v1904_v19 }
 0x9b3   :  { %1488 = vmatprep.subr.mxu0 %v1803_v14 }
 0x9b4   :  { %1489 = vmatpush3.msra.mxu0 %v1910_v20 }
 0x9b5   :  { %1490 = vmatprep.subr.mxu0 %v1803_v14 }
 0x9b6   :  { %1491 = vmatpush3.msra.mxu0 %v1916_v21 }
 0x9b7   :  { %1492 = vmatprep.subr.mxu0 %v1803_v14 }
 0x9b8   :  { %1493 = vmatpush3.msra.mxu0 %v1922_v22 }
 0x9b9   :  { %1494 = vmatprep.subr.mxu0 %v1803_v14 }
 0x9ba   :  { %1495 = vmatpush3.msra.mxu0 %v1928_v23 }
 0x9bb   :  { %1496 = vmatprep.subr.mxu0 %v1803_v14 }
 0x9bc   :  { %1497 = vmatpush3.msra.mxu0 %v1934_v24 }
 0x9bd   :  { %1498 = vmatprep.subr.mxu0 %v1803_v14 }
 0x9be   :  { %1499 = vmatpush3.msra.mxu0 %v1940_v25 }
 0x9bf   :  { %1500 = vmatprep.subr.mxu0 %v1803_v14 }
 0x9c0   :  { %1501 = vmatpush3.msra.mxu0 %v1946_v26 }
 0x9c1   :  { %1502 = vmatprep.subr.mxu0 %v1803_v14 }
 0x9c2   :  { %1503 = vmatpush3.msra.mxu0 %v1957_v27 }
 0x9c3   :  { %1504 = vmatprep.subr.mxu0 %v1803_v14 }
 0x9c4   :  { %1505 = vmatpush3.msra.mxu0 %v1962_v29 }
 0x9c5   :  { %1506 = vmatprep.subr.mxu0 %v1803_v14 }
 0x9c6   :  { %1507 = vmatpush3.msra.mxu0 %v1968_v31 }
 0xa3a   :  { %v732_v27 = vpop.xlane.xlu0 %731 }
 0xa3b   :  { %v733_v29 = vrot.slane %v732_v27, 4 }
 0xa3d   :  { %v734_v43 = vmax.f32 %v732_v27, %v733_v29 }
 0xa3f   :  { %v735_v12 = vrot.slane %v734_v43, 2 }
 0xa41   :  { %v736_v28 = vmax.f32 %v734_v43, %v735_v12 }
 0xa43   :  { %v737_v30 = vrot.slane %v736_v28, 1 }
 0xa45   :  { %v738_v33 = vmax.f32 %v736_v28, %v737_v30 }
 0xa67   :  { %v695_v15 = vpop.f32.mrf.mxu0 }
 0xa68   :  { %v702_v16 = vadd.f32 %v701_v0, %v695_v15  ;;  %v1663_v0 = vld [vmem:[#allocation10 + $0x28] sm:$0xff] }
 0xa69   :  { %v1440_v17 = vpop.f32.mrf.mxu0 }
 0xa6a   :  { %v703_v18 = vmul.f32 1.2, %v702_v16  ;;  %v818_v37 = vmul.f32 0.5, %v702_v16 }
 0xa6c   :  { %v704_v19 = vsel %vm2033_vm6, %v703_v18, -inf }
 0xa6d   :  { %705 = vmax.xlane.f32.xlu1 %v704_v19 }
 0xaf6   :  { %v706_v20 = vpop.xlane.xlu1 %705 }
 0xaf7   :  { %v707_v21 = vrot.slane %v706_v20, 4 }
 0xaf9   :  { %v708_v22 = vmax.f32 %v706_v20, %v707_v21 }
 0xafb   :  { %v709_v23 = vrot.slane %v708_v22, 2 }
 0xafd   :  { %v710_v24 = vmax.f32 %v708_v22, %v709_v23 }
 0xaff   :  { %v711_v25 = vrot.slane %v710_v24, 1 }
 0xb01   :  { %v712_v26 = vmax.f32 %v710_v24, %v711_v25 }
 0xb03   :  { %1582 = vpush %v712_v26 }
 0xb34   :  { %s1583_s20 = spop %1582 }
 0xb35   :  { %v714_v7 = vstv %s1583_s20 }
 0xb36   :  { %1639 = vtanh.f32 %v714_v7 }
 0xb43   :  { %v1640_v32 = vpop.eup %1639 }
 0xb44   :  { %1584 = vpush %v1640_v32 }
 0xb45   :  { %1586 = vpush %v738_v33 }
 0xb75   :  { %s1585_s2 = spop %1584 }
 0xb76   :  { %s717_s4 = smul.f32 0.3, %s1585_s2  ;;  %s1587_s21 = spop %1586 }
 0xb77   :  { %v740_v34 = vstv %s1587_s21 }
 0xb78   :  { %v718_v35 = vstv %s717_s4  ;;  %1641 = vtanh.f32 %v740_v34 }
 0xb79   :  { %vm719_vm15 = vcmp.gt.f32.partialorder %v703_v18, %v718_v35 }
 0xb7a   :  { %v1120_v36 = vsel %vm719_vm15, 1.0, %v1803_v14 }
 0xb7b   :  { %v2258_v38 = vadd.f32 %v1120_v36, %v2207_v55  ;;  %v819_v39 = vsub.f32 1.0, %v1120_v36  ;;  %v1661_v55 = vld [vmem:[#allocation10 + $0x38] sm:$0xff] }
 0xb7d   :  { %v2260_v40 = vmul.f32 %v819_v39, %v818_v37 }
 0xb85   :  { %v1642_v41 = vpop.eup %1641 }
 0xb86   :  { %1588 = vpush %v1642_v41 }
 0xbb7   :  { %s1589_s22 = spop %1588 }
 0xbb8   :  { %s743_s23 = smul.f32 0.3, %s1589_s22 }
 0xbba   :  { %v744_v44 = vstv %s743_s23 }
 0xbbb   :  { %vm745_vm0 = vcmp.gt.f32.partialorder %v2224_v11, %v744_v44 }
 0xbbc   :  { %v1121_v45 = vsel %vm745_vm0, 1.0, %v1803_v14  ;;  %1474 = vmatmul.mubr.msk.f32.vlgmr.msra.gmra.mxu1 %vm745_vm0, %v1805_v42 }
 0xbbd   :  { %v845_v47 = vsub.f32 1.0, %v1121_v45  ;;  %1512 = vmatpush3.msra.mxu1 %v1653_v48  ;;  %1543 = vmatprep.mubr.msk.f32.mxu1 %vm1804_vm3, %v1803_v14 }
 0xbbe   :  { %1513 = vmatprep.subr.mxu1 %v1803_v14 }
 0xbbf   :  { %v846_v50 = vmul.f32 %v845_v47, %v844_v46  ;;  %1514 = vmatpush3.msra.mxu1 %v1654_v51 }
 0xbc0   :  { %1515 = vmatprep.subr.mxu1 %v1803_v14 }
 0xbc1   :  { %v2270_v52 = vadd.f32 %v846_v50, %v843_v49  ;;  %1516 = vmatpush3.msra.mxu1 %v1655_v53 }
 0xbc2   :  { %1517 = vmatprep.subr.mxu1 %v1803_v14 }
 0xbc3   :  { %v2274_v54 = vmul.f32 1.2, %v2270_v52  ;;  %1518 = vmatpush3.msra.mxu1 %v1656_v56  ;;  %v963_v37 = vmul.f32 0.5, %v2270_v52 }
 0xbc4   :  { %1519 = vmatprep.subr.mxu1 %v1803_v14 }
 0xbc5   :  { %v849_v58 = vsel %vm1867_vm2, %v2274_v54, -inf  ;;  %1520 = vmatpush3.msra.mxu1 %v1657_v59 }
 0xbc6   :  { %850 = vmax.xlane.f32.xlu0 %v849_v58  ;;  %1521 = vmatprep.subr.mxu1 %v1803_v14 }
 0xbc7   :  { %1522 = vmatpush3.msra.mxu1 %v1658_v60 }
 0xbc8   :  { %1523 = vmatprep.subr.mxu1 %v1803_v14 }
 0xbc9   :  { %1524 = vmatpush3.msra.mxu1 %v1659_v61 }
 0xbca   :  { %1525 = vmatprep.subr.mxu1 %v1803_v14 }
 0xbcb   :  { %1526 = vmatpush3.msra.mxu1 %v1660_v62 }
 0xbcc   :  { %1527 = vmatprep.subr.mxu1 %v1803_v14 }
 0xbcd   :  { %1528 = vmatpush3.msra.mxu1 %v1661_v55 }
 0xbce   :  { %1529 = vmatprep.subr.mxu1 %v1803_v14 }
 0xbcf   :  { %1530 = vmatpush3.msra.mxu1 %v1662_v63 }
 0xbd0   :  { %1531 = vmatprep.subr.mxu1 %v1803_v14 }
 0xbd1   :  { %1532 = vmatpush3.msra.mxu1 %v1663_v0 }
 0xbd2   :  { %1533 = vmatprep.subr.mxu1 %v1803_v14 }
 0xbd3   :  { %1534 = vmatpush3.msra.mxu1 %v1664_v2 }
 0xbd4   :  { %1535 = vmatprep.subr.mxu1 %v1803_v14 }
 0xbd5   :  { %1536 = vmatpush3.msra.mxu1 %v1665_v3 }
 0xbd6   :  { %1537 = vmatprep.subr.mxu1 %v1803_v14 }
 0xbd7   :  { %1538 = vmatpush3.msra.mxu1 %v1666_v1 }
 0xbd8   :  { %1539 = vmatprep.subr.mxu1 %v1803_v14 }
 0xbd9   :  { %1540 = vmatpush3.msra.mxu1 %v1667_v5 }
 0xbda   :  { %1541 = vmatprep.subr.mxu1 %v1803_v14 }
 0xbdb   :  { %1542 = vmatpush3.msra.mxu1 %v1968_v31 }
 0xc4f   :  { %v851_v21 = vpop.xlane.xlu0 %850 }
 0xc50   :  { %v852_v22 = vrot.slane %v851_v21, 4 }
 0xc52   :  { %v853_v31 = vmax.f32 %v851_v21, %v852_v22 }
 0xc54   :  { %v854_v24 = vrot.slane %v853_v31, 2 }
 0xc56   :  { %v855_v25 = vmax.f32 %v853_v31, %v854_v24 }
 0xc58   :  { %v856_v26 = vrot.slane %v855_v25, 1 }
 0xc5a   :  { %v857_v29 = vmax.f32 %v855_v25, %v856_v26 }
 0xc7c   :  { %v814_v6 = vpop.f32.mrf.mxu1 }
 0xc7d   :  { %v821_v4 = vadd.f32 %v2260_v40, %v814_v6  ;;  %v962_v40 = vld [vmem:[#allocation7 + $0x38] sm:$0xff] }
 0xc7e   :  { %v1475_v8 = vpop.f32.mrf.mxu1 }
 0xc7f   :  { %v822_v9 = vmul.f32 1.2, %v821_v4  ;;  %v937_v28 = vmul.f32 0.5, %v821_v4 }
 0xc81   :  { %v823_v11 = vsel %vm2033_vm6, %v822_v9, -inf }
 0xc82   :  { %824 = vmax.xlane.f32.xlu1 %v823_v11 }
 0xd0b   :  { %v825_v13 = vpop.xlane.xlu1 %824 }
 0xd0c   :  { %v826_v15 = vrot.slane %v825_v13, 4 }
 0xd0e   :  { %v827_v16 = vmax.f32 %v825_v13, %v826_v15 }
 0xd10   :  { %v828_v17 = vrot.slane %v827_v16, 2 }
 0xd12   :  { %v829_v18 = vmax.f32 %v827_v16, %v828_v17 }
 0xd14   :  { %v830_v19 = vrot.slane %v829_v18, 1 }
 0xd16   :  { %v831_v20 = vmax.f32 %v829_v18, %v830_v19 }
 0xd18   :  { %1590 = vpush %v831_v20 }
 0xd49   :  { %s1591_s5 = spop %1590 }
 0xd4a   :  { %v833_v23 = vstv %s1591_s5 }
 0xd4b   :  { %1643 = vtanh.f32 %v833_v23 }
 0xd58   :  { %v1644_v27 = vpop.eup %1643 }
 0xd59   :  { %1592 = vpush %v1644_v27 }
 0xd5a   :  { %1594 = vpush %v857_v29 }
 0xd8a   :  { %s1593_s24 = spop %1592 }
 0xd8b   :  { %s836_s25 = smul.f32 0.3, %s1593_s24  ;;  %s1595_s26 = spop %1594 }
 0xd8c   :  { %v859_v43 = vstv %s1595_s26 }
 0xd8d   :  { %v837_v7 = vstv %s836_s25  ;;  %1645 = vtanh.f32 %v859_v43 }
 0xd8e   :  { %vm838_vm1 = vcmp.gt.f32.partialorder %v822_v9, %v837_v7 }
 0xd8f   :  { %v1123_v12 = vsel %vm838_vm1, 1.0, %v1803_v14 }
 0xd90   :  { %v841_v30 = vadd.f32 %v1123_v12, %v2258_v38  ;;  %v938_v32 = vsub.f32 1.0, %v1123_v12 }
 0xd92   :  { %v939_v33 = vmul.f32 %v938_v32, %v937_v28 }
 0xd9a   :  { %v1646_v34 = vpop.eup %1645 }
 0xd9b   :  { %1596 = vpush %v1646_v34 }
 0xdcc   :  { %s1597_s27 = spop %1596 }
 0xdcd   :  { %s862_s28 = smul.f32 0.3, %s1597_s27 }
 0xdcf   :  { %v863_v35 = vstv %s862_s28 }
 0xdd0   :  { %vm864_vm3 = vcmp.gt.f32.partialorder %v2274_v54, %v863_v35 }
 0xdd1   :  { %v1124_v36 = vsel %vm864_vm3, 1.0, %v1803_v14  ;;  %1509 = vmatmul.mubr.msk.f32.vlgmr.msra.gmra.mxu0 %vm864_vm3, %v1805_v42 }
 0xdd2   :  { %v964_v39 = vsub.f32 1.0, %v1124_v36 }
 0xdd4   :  { %v965_v41 = vmul.f32 %v964_v39, %v963_v37 }
 0xdd6   :  { %v966_v44 = vadd.f32 %v965_v41, %v962_v40 }
 0xdd8   :  { %v967_v38 = vmul.f32 1.2, %v966_v44 }
 0xdda   :  { %v968_v45 = vsel %vm1867_vm2, %v967_v38, -inf }
 0xddb   :  { %969 = vmax.xlane.f32.xlu0 %v968_v45 }
 0xe64   :  { %v970_v60 = vpop.xlane.xlu0 %969 }
 0xe65   :  { %v971_v10 = vrot.slane %v970_v60, 4 }
 0xe67   :  { %v972_v61 = vmax.f32 %v970_v60, %v971_v10 }
 0xe69   :  { %v973_v55 = vrot.slane %v972_v61, 2 }
 0xe6b   :  { %v974_v63 = vmax.f32 %v972_v61, %v973_v55 }
 0xe6d   :  { %v975_v0 = vrot.slane %v974_v63, 1 }
 0xe6f   :  { %v976_v3 = vmax.f32 %v974_v63, %v975_v0 }
 0xe91   :  { %v933_v46 = vpop.f32.mrf.mxu0 }
 0xe92   :  { %v940_v47 = vadd.f32 %v939_v33, %v933_v46 }
 0xe93   :  { %v1510_v48 = vpop.f32.mrf.mxu0 }
 0xe94   :  { %v941_v49 = vmul.f32 1.2, %v940_v47  ;;  %v1056_v4 = vmul.f32 0.5, %v940_v47 }
 0xe96   :  { %v942_v50 = vsel %vm2033_vm6, %v941_v49, -inf }
 0xe97   :  { %943 = vmax.xlane.f32.xlu1 %v942_v50 }
 0xf20   :  { %v944_v51 = vpop.xlane.xlu1 %943 }
 0xf21   :  { %v945_v53 = vrot.slane %v944_v51, 4 }
 0xf23   :  { %v946_v52 = vmax.f32 %v944_v51, %v945_v53 }
 0xf25   :  { %v947_v54 = vrot.slane %v946_v52, 2 }
 0xf27   :  { %v948_v56 = vmax.f32 %v946_v52, %v947_v54 }
 0xf29   :  { %v949_v58 = vrot.slane %v948_v56, 1 }
 0xf2b   :  { %v950_v59 = vmax.f32 %v948_v56, %v949_v58 }
 0xf2d   :  { %1598 = vpush %v950_v59 }
 0xf5e   :  { %s1599_s29 = spop %1598 }
 0xf5f   :  { %v952_v62 = vstv %s1599_s29 }
 0xf60   :  { %1647 = vtanh.f32 %v952_v62 }
 0xf6d   :  { %v1648_v2 = vpop.eup %1647 }
 0xf6e   :  { %1600 = vpush %v1648_v2 }
 0xf6f   :  { %1602 = vpush %v976_v3 }
 0xf9f   :  { %s1601_s30 = spop %1600 }
 0xfa0   :  { %s955_s7 = smul.f32 0.3, %s1601_s30  ;;  %s1603_s8 = spop %1602 }
 0xfa1   :  { %v978_v1 = vstv %s1603_s8 }
 0xfa2   :  { %v956_v5 = vstv %s955_s7  ;;  %1649 = vtanh.f32 %v978_v1 }
 0xfa3   :  { %vm957_vm2 = vcmp.gt.f32.partialorder %v941_v49, %v956_v5 }
 0xfa4   :  { %v1126_v6 = vsel %vm957_vm2, 1.0, %v1803_v14 }
 0xfa5   :  { %v960_v8 = vadd.f32 %v1126_v6, %v841_v30  ;;  %v1057_v9 = vsub.f32 1.0, %v1126_v6 }
 0xfa7   :  { %v1058_v11 = vmul.f32 %v1057_v9, %v1056_v4 }
 0xfaf   :  { %v1650_v13 = vpop.eup %1649 }
 0xfb0   :  { %1604 = vpush %v1650_v13 }
 0xfe1   :  { %s1605_s9 = spop %1604 }
 0xfe2   :  { %s981_s10 = smul.f32 0.3, %s1605_s9 }
 0xfe4   :  { %v982_v15 = vstv %s981_s10 }
 0xfe5   :  { %vm983_vm4 = vcmp.gt.f32.partialorder %v967_v38, %v982_v15 }
 0xfe6   :  { %1544 = vmatmul.mubr.msk.f32.vlgmr.msra.gmra.mxu1 %vm983_vm4, %v1805_v42 }
0x10a6   :  { %v1052_v16 = vpop.f32.mrf.mxu1 }
0x10a7   :  { %v1059_v17 = vadd.f32 %v1058_v11, %v1052_v16 }
0x10a8   :  { %v1545_v18 = vpop.f32.mrf.mxu1 }
0x10a9   :  { %v1060_v19 = vmul.f32 1.2, %v1059_v17 }
0x10ab   :  { %v1061_v20 = vsel %vm2033_vm6, %v1060_v19, -inf }
0x10ac   :  { %1062 = vmax.xlane.f32.xlu1 %v1061_v20 }
0x1135   :  { %v1063_v21 = vpop.xlane.xlu1 %1062 }
0x1136   :  { %v1064_v22 = vrot.slane %v1063_v21, 4 }
0x1138   :  { %v1065_v31 = vmax.f32 %v1063_v21, %v1064_v22 }
0x113a   :  { %v1066_v23 = vrot.slane %v1065_v31, 2 }
0x113c   :  { %v1067_v24 = vmax.f32 %v1065_v31, %v1066_v23 }
0x113e   :  { %v1068_v25 = vrot.slane %v1067_v24, 1 }
0x1140   :  { %v1069_v26 = vmax.f32 %v1067_v24, %v1068_v25 }
0x1142   :  { %1606 = vpush %v1069_v26 }
0x1173   :  { %s1607_s11 = spop %1606 }
0x1174   :  { %v1071_v27 = vstv %s1607_s11 }
0x1175   :  { %1651 = vtanh.f32 %v1071_v27 }
0x1182   :  { %v1652_v42 = vpop.eup %1651 }
0x1183   :  { %1608 = vpush %v1652_v42 }
0x11b4   :  { %s1609_s12 = spop %1608 }
0x11b5   :  { %s1074_s13 = smul.f32 0.3, %s1609_s12 }
0x11b7   :  { %v1075_v29 = vstv %s1074_s13 }
0x11b8   :  { %vm1076_vm5 = vcmp.gt.f32.partialorder %v1060_v19, %v1075_v29 }
0x11b9   :  { %v1129_v57 = vsel %vm1076_vm5, 1.0, %v1803_v14 }
0x11ba   :  { %v1079_v43 = vadd.f32 %v1129_v57, %v960_v8 }
0x11bc   :  { %1088 = vst [vmem:[#allocation16] sm:$0xff] %v1079_v43 }
0x11bd   :  { %1779 = shalt.err (!%p1776_p1)
}
0x11be   :  { %1098 = dma.vmem_to_hbm [thread:$0]  %s1096_s14, 128, %s2319_s6, [#allocation9]  }
0x11bf   :  { %1794 = dma.done.wait [#allocation9], 128  }
0x11c0   :  { %1795 = vsyncadd [#allocation9], 4294967168 }
0x11c1   :  { %1102 = vsyncpa [#allocation8], 1 }
0x11c2   :  { %1103 = vsyncpa [#allocation11], 1 }
0x11c3   :  { %1104 = vsyncpa [#allocation14], 1 }
0x11c4   :  { %1105 = vsyncpa [#allocation9], 1 }

</bundles_post_ra>
